<compile_context>
chip_gen: v7x
topology: tpu7x:2x2x1
jax: 0.10.0
libtpu: 0.0.40
codegen_flags: <defaults>
</compile_context>

<pallas_src>
import math

import jax
import jax.numpy as jnp
import numpy as np
from jax.experimental import pallas as pl
from jax.experimental.pallas import tpu as pltpu

# --- small, TPU-friendly shapes consistent with the module's structure ---
BATCH = 2
SEQ = 8
DIM = 128          # stands in for 768
HIDDEN = 256       # stands in for 1536
HEADS = 16         # Encoder uses MultiHeadAttention(dim) -> default num_heads=16
HEAD_DIM = DIM // HEADS
EPS = 1e-12        # nn.LayerNorm(dim, eps=1e-12)


def _erf(x):
    # Abramowitz & Stegun 7.1.26 polynomial (|err| < 1.5e-7); exp + elementwise only.
    # Reciprocal goes to the EUP (approx) + one Newton-Raphson step -> near-exact,
    # and it frees VALU issue slots on the largest tensor in the kernel (S, HIDDEN).
    a1, a2, a3, a4, a5 = 0.254829592, -0.284496736, 1.421413741, -1.453152027, 1.061405429
    p = 0.3275911
    ax = jnp.abs(x)
    d = 1.0 + p * ax
    r = pl.reciprocal(d, approx=True)
    t = r * (2.0 - d * r)                       # one NR refinement: rel err ~1e-7
    poly = ((((a5 * t + a4) * t + a3) * t + a2) * t + a1) * t
    y = 1.0 - poly * jnp.exp(-ax * ax)
    return jnp.where(x >= 0, y, -y)


def _gelu_exact(x):
    # PyTorch nn.GELU() default = exact (erf-based) GELU.
    return 0.5 * x * (1.0 + _erf(x * (1.0 / math.sqrt(2.0))))


def _layernorm(x, gamma, beta):
    mu = jnp.mean(x, axis=-1, keepdims=True)
    xc = x - mu
    var = jnp.mean(xc * xc, axis=-1, keepdims=True)   # biased variance (PyTorch LN)
    return xc * jax.lax.rsqrt(var + EPS) * gamma + beta


def encoder_kernel(x_ref,
                   wqkv_ref, bqkv_ref, wo_heads_ref, bo_ref,
                   g1_ref, be1_ref,
                   w1_ref, b1_ref, w2_ref, b2_ref,
                   g2_ref, be2_ref,
                   o_ref):
    # One grid step == one sequence (batch element). No cross-sequence work, no mask.
    x = x_ref[0]                                     # (S, D) f32
    x_bf = x.astype(jnp.bfloat16)

    # ---- fused Q/K/V projection: one bf16 MXU pass with N-dim = 3*D ----
    qkv = jnp.dot(x_bf, wqkv_ref[...], preferred_element_type=jnp.float32) + bqkv_ref[...]
    q = qkv[:, :DIM]
    k = qkv[:, DIM:2 * DIM]
    v = qkv[:, 2 * DIM:]

    scale = 1.0 / math.sqrt(HEAD_DIM)

    # ---- multi-head self-attention with the output projection folded per head ----
    # attn_acc stays a lane-dense (S, D) f32 value; wo_heads_ref[h] is a clean
    # leading-axis (HEAD_DIM, D) load -> no width-8 masked stores, no scratch slab.
    attn_acc = jnp.zeros((SEQ, DIM), jnp.float32)
    for h in range(HEADS):                           # static unroll over heads
        sl = slice(h * HEAD_DIM, (h + 1) * HEAD_DIM)
        qh, kh, vh = q[:, sl], k[:, sl], v[:, sl]    # (S, head_dim) f32
        s = jax.lax.dot_general(qh, kh, (((1,), (1,)), ((), ())),
                                preferred_element_type=jnp.float32) * scale
        s = s - jnp.max(s, axis=-1, keepdims=True)
        p = jnp.exp(s)
        p = p * pl.reciprocal(jnp.sum(p, axis=-1, keepdims=True), approx=True)
        ctx = jnp.dot(p, vh, preferred_element_type=jnp.float32)       # (S, head_dim)
        attn_acc = attn_acc + jnp.dot(ctx.astype(jnp.bfloat16), wo_heads_ref[h],
                                      preferred_element_type=jnp.float32)

    attn = attn_acc + bo_ref[...]

    # dropout(p=0.1) -> identity (eval mode)
    x1 = _layernorm(x + attn, g1_ref[...], be1_ref[...])

    # ---- MLP: Linear -> GELU -> Linear (dropout = identity) ----
    h1 = jnp.dot(x1.astype(jnp.bfloat16), w1_ref[...],
                 preferred_element_type=jnp.float32) + b1_ref[...]
    h1 = _gelu_exact(h1)
    mlp = jnp.dot(h1.astype(jnp.bfloat16), w2_ref[...],
                  preferred_element_type=jnp.float32) + b2_ref[...]

    x2 = x1 + mlp
    o_ref[0] = _layernorm(x2, g2_ref[...], be2_ref[...])


@jax.jit
def encoder_forward(x, params):
    B, S, D = x.shape
    x = x.astype(jnp.float32)

    # Fused QKV weight/bias; matmul weights in bf16 (halves weight VMEM/HBM traffic,
    # bf16-native MXU on v5e/v6e/v7x); biases & LN params stay f32.
    wqkv = jnp.concatenate([params["wq"], params["wk"], params["wv"]], axis=1).astype(jnp.bfloat16)
    bqkv = jnp.concatenate([params["bq"], params["bk"], params["bv"]], axis=1)
    # wo laid out head-major on the host: row block h of wo == output-projection weights
    # for head h, so the kernel folds the projection per head with a leading-axis index.
    wo_heads = params["wo"].reshape(HEADS, HEAD_DIM, DIM).astype(jnp.bfloat16)
    w1 = params["w1"].astype(jnp.bfloat16)
    w2 = params["w2"].astype(jnp.bfloat16)

    inputs = (x,
              wqkv, bqkv, wo_heads, params["bo"],
              params["g1"], params["be1"],
              w1, params["b1"], w2, params["b2"],
              params["g2"], params["be2"])

    def resident(shape):
        # Constant index_map: staged into VMEM once, never re-fetched across grid steps.
        return pl.BlockSpec(shape, lambda b, _n=len(shape): (0,) * _n)

    in_specs = [
        pl.BlockSpec((1, S, D), lambda b: (b, 0, 0)),        # x: one sequence per step
        resident((D, 3 * D)),                                # wqkv
        resident((1, 3 * D)),                                # bqkv
        resident((HEADS, HEAD_DIM, D)),                      # wo (head-major)
        resident((1, D)),                                    # bo
        resident((1, D)), resident((1, D)),                  # LN1 gamma / beta
        resident((D, HIDDEN)), resident((1, HIDDEN)),        # MLP w1 / b1
        resident((HIDDEN, D)), resident((1, D)),             # MLP w2 / b2
        resident((1, D)), resident((1, D)),                  # LN2 gamma / beta
    ]

    out = pl.pallas_call(
        encoder_kernel,
        out_shape=jax.ShapeDtypeStruct((B, S, D), jnp.float32),
        grid=(B,),
        in_specs=in_specs,
        out_specs=pl.BlockSpec((1, S, D), lambda b: (b, 0, 0)),
        compiler_params=pltpu.CompilerParams(
            dimension_semantics=("parallel",)),
    )(*inputs)
    return out


# ---------------- deterministic parameter init (PyTorch-style uniform) ----------------
def init_params(key):
    def linear(key, fan_in, fan_out):
        k1, k2 = jax.random.split(key)
        bound = 1.0 / math.sqrt(fan_in)
        w = jax.random.uniform(k1, (fan_in, fan_out), jnp.float32, -bound, bound)
        b = jax.random.uniform(k2, (1, fan_out), jnp.float32, -bound, bound)
        return w, b

    keys = jax.random.split(key, 6)
    p = {}
    p["wq"], p["bq"] = linear(keys[0], DIM, DIM)
    p["wk"], p["bk"] = linear(keys[1], DIM, DIM)
    p["wv"], p["bv"] = linear(keys[2], DIM, DIM)
    p["wo"], p["bo"] = linear(keys[3], DIM, DIM)
    p["w1"], p["b1"] = linear(keys[4], DIM, HIDDEN)
    p["w2"], p["b2"] = linear(keys[5], HIDDEN, DIM)
    # LayerNorm affine params: gamma=1, beta=0 (PyTorch default init)
    p["g1"], p["be1"] = jnp.ones((1, DIM), jnp.float32), jnp.zeros((1, DIM), jnp.float32)
    p["g2"], p["be2"] = jnp.ones((1, DIM), jnp.float32), jnp.zeros((1, DIM), jnp.float32)
    return p


# ---------------- pure-JAX f32 reference for a sanity check ----------------
def encoder_ref(x, p):
    def lin(t, w, b):
        return t @ w + b

    B, S, D = x.shape
    q = lin(x, p["wq"], p["bq"]).reshape(B, S, HEADS, HEAD_DIM).transpose(0, 2, 1, 3)
    k = lin(x, p["wk"], p["bk"]).reshape(B, S, HEADS, HEAD_DIM).transpose(0, 2, 1, 3)
    v = lin(x, p["wv"], p["bv"]).reshape(B, S, HEADS, HEAD_DIM).transpose(0, 2, 1, 3)
    s = jnp.einsum("bhqd,bhkd->bhqk", q, k) / (HEAD_DIM ** 0.5)
    a = jax.nn.softmax(s, axis=-1)
    o = jnp.einsum("bhqk,bhkd->bhqd", a, v).transpose(0, 2, 1, 3).reshape(B, S, D)
    attn = lin(o, p["wo"], p["bo"])
    x1 = x + attn
    x1 = _layernorm(x1, p["g1"], p["be1"])
    h = jax.nn.gelu(lin(x1, p["w1"], p["b1"]), approximate=False)
    mlp = lin(h, p["w2"], p["b2"])
    x2 = x1 + mlp
    return _layernorm(x2, p["g2"], p["be2"])


if __name__ == "__main__":
    key = jax.random.PRNGKey(0)
    kx, kp = jax.random.split(key)
    x = jax.random.normal(kx, (BATCH, SEQ, DIM), jnp.float32)
    params = init_params(kp)

    out = jax.block_until_ready(encoder_forward(x, params))

    ref = encoder_ref(x, params)
    np.testing.assert_allclose(np.asarray(out), np.asarray(ref), rtol=2e-2, atol=2e-2)
    assert out.shape == (BATCH, SEQ, DIM)
    print("KERNEL_OK")
</pallas_src>

<mosaic_0001>
module attributes {stable_mosaic.version = 11 : i64} {
  func.func @encoder_kernel(%arg0: i32, %arg1: memref<1x8x128xf32, #tpu.memory_space<vmem>>, %arg2: memref<128x384xbf16, #tpu.memory_space<vmem>>, %arg3: memref<1x384xf32, #tpu.memory_space<vmem>>, %arg4: memref<16x8x128xbf16, #tpu.memory_space<vmem>>, %arg5: memref<1x128xf32, #tpu.memory_space<vmem>>, %arg6: memref<1x128xf32, #tpu.memory_space<vmem>>, %arg7: memref<1x128xf32, #tpu.memory_space<vmem>>, %arg8: memref<128x256xbf16, #tpu.memory_space<vmem>>, %arg9: memref<1x256xf32, #tpu.memory_space<vmem>>, %arg10: memref<256x128xbf16, #tpu.memory_space<vmem>>, %arg11: memref<1x128xf32, #tpu.memory_space<vmem>>, %arg12: memref<1x128xf32, #tpu.memory_space<vmem>>, %arg13: memref<1x128xf32, #tpu.memory_space<vmem>>, %arg14: memref<1x8x128xf32, #tpu.memory_space<vmem>>) attributes {dimension_semantics = [#tpu.dimension_semantics<parallel>], iteration_bounds = array<i64: 2>, scalar_prefetch = 0 : i64, scratch_operands = 0 : i64, tpu.core_type = #tpu.core_type<tc>, window_params = [{transform_indices = @transform_0, window_bounds = array<i64: 1, 8, 128>}, {pipeline_mode = #tpu.pipeline_mode<synchronous>, transform_indices = @transform_1, window_bounds = array<i64: 128, 384>}, {pipeline_mode = #tpu.pipeline_mode<synchronous>, transform_indices = @transform_2, window_bounds = array<i64: 1, 384>}, {pipeline_mode = #tpu.pipeline_mode<synchronous>, transform_indices = @transform_3, window_bounds = array<i64: 16, 8, 128>}, {pipeline_mode = #tpu.pipeline_mode<synchronous>, transform_indices = @transform_4, window_bounds = array<i64: 1, 128>}, {pipeline_mode = #tpu.pipeline_mode<synchronous>, transform_indices = @transform_5, window_bounds = array<i64: 1, 128>}, {pipeline_mode = #tpu.pipeline_mode<synchronous>, transform_indices = @transform_6, window_bounds = array<i64: 1, 128>}, {pipeline_mode = #tpu.pipeline_mode<synchronous>, transform_indices = @transform_7, window_bounds = array<i64: 128, 256>}, {pipeline_mode = #tpu.pipeline_mode<synchronous>, transform_indices = @transform_8, window_bounds = array<i64: 1, 256>}, {pipeline_mode = #tpu.pipeline_mode<synchronous>, transform_indices = @transform_9, window_bounds = array<i64: 256, 128>}, {pipeline_mode = #tpu.pipeline_mode<synchronous>, transform_indices = @transform_10, window_bounds = array<i64: 1, 128>}, {pipeline_mode = #tpu.pipeline_mode<synchronous>, transform_indices = @transform_11, window_bounds = array<i64: 1, 128>}, {pipeline_mode = #tpu.pipeline_mode<synchronous>, transform_indices = @transform_12, window_bounds = array<i64: 1, 128>}, {transform_indices = @transform_13, window_bounds = array<i64: 1, 8, 128>}]} {
    %c0 = arith.constant 0 : index
    %c0_0 = arith.constant 0 : index
    %c0_1 = arith.constant 0 : index
    %0 = vector.load %arg1[%c0, %c0_0, %c0_1] : memref<1x8x128xf32, #tpu.memory_space<vmem>>, vector<1x8x128xf32>
    %1 = vector.shape_cast %0 : vector<1x8x128xf32> to vector<8x128xf32>
    %2 = arith.truncf %1 : vector<8x128xf32> to vector<8x128xbf16>
    %c0_2 = arith.constant 0 : index
    %c0_3 = arith.constant 0 : index
    %3 = vector.load %arg2[%c0_2, %c0_3] : memref<128x384xbf16, #tpu.memory_space<vmem>>, vector<128x384xbf16>
    %cst = arith.constant dense<0.000000e+00> : vector<8x384xf32>
    %4 = tpu.matmul %2, %3, %cst {dimension_numbers = #tpu.dot_dimension_numbers<[1], [0], [0], [1], [0, 0, 1, 1], [], []>} : vector<8x128xbf16>, vector<128x384xbf16>, vector<8x384xf32> -> vector<8x384xf32>
    %c0_4 = arith.constant 0 : index
    %c0_5 = arith.constant 0 : index
    %5 = vector.load %arg3[%c0_4, %c0_5] : memref<1x384xf32, #tpu.memory_space<vmem>>, vector<1x384xf32>
    %6 = vector.broadcast %5 : vector<1x384xf32> to vector<8x384xf32>
    %7 = arith.addf %4, %6 : vector<8x384xf32>
    %8 = vector.extract_strided_slice %7 {offsets = [0, 0], sizes = [8, 128], strides = [1, 1]} : vector<8x384xf32> to vector<8x128xf32>
    %9 = vector.extract_strided_slice %7 {offsets = [0, 128], sizes = [8, 128], strides = [1, 1]} : vector<8x384xf32> to vector<8x128xf32>
    %10 = vector.extract_strided_slice %7 {offsets = [0, 256], sizes = [8, 128], strides = [1, 1]} : vector<8x384xf32> to vector<8x128xf32>
    %cst_6 = arith.constant 0.000000e+00 : f32
    %11 = vector.broadcast %cst_6 : f32 to vector<8x128xf32>
    %12 = vector.extract_strided_slice %8 {offsets = [0, 0], sizes = [8, 8], strides = [1, 1]} : vector<8x128xf32> to vector<8x8xf32>
    %13 = vector.extract_strided_slice %9 {offsets = [0, 0], sizes = [8, 8], strides = [1, 1]} : vector<8x128xf32> to vector<8x8xf32>
    %14 = vector.extract_strided_slice %10 {offsets = [0, 0], sizes = [8, 8], strides = [1, 1]} : vector<8x128xf32> to vector<8x8xf32>
    %cst_7 = arith.constant dense<0.000000e+00> : vector<8x8xf32>
    %15 = tpu.matmul %12, %13, %cst_7 {dimension_numbers = #tpu.dot_dimension_numbers<[1], [1], [0], [0], [0, 0, 1, 0], [], []>} : vector<8x8xf32>, vector<8x8xf32>, vector<8x8xf32> -> vector<8x8xf32>
    %cst_8 = arith.constant 0.353553385 : f32
    %16 = vector.broadcast %cst_8 : f32 to vector<8x8xf32>
    %17 = arith.mulf %15, %16 : vector<8x8xf32>
    %cst_9 = arith.constant dense<0xFF800000> : vector<8xf32>
    %18 = vector.multi_reduction <maximumf>, %17, %cst_9 [1] : vector<8x8xf32> to vector<8xf32>
    %19 = vector.shape_cast %18 : vector<8xf32> to vector<8x1xf32>
    %20 = vector.broadcast %19 : vector<8x1xf32> to vector<8x8xf32>
    %21 = arith.subf %17, %20 : vector<8x8xf32>
    %22 = math.exp %21 : vector<8x8xf32>
    %cst_10 = arith.constant dense<0.000000e+00> : vector<8xf32>
    %23 = vector.multi_reduction <add>, %22, %cst_10 [1] : vector<8x8xf32> to vector<8xf32>
    %24 = vector.shape_cast %23 : vector<8xf32> to vector<8x1xf32>
    %25 = tpu.reciprocal %24 {approx = true} : vector<8x1xf32> -> vector<8x1xf32>
    %26 = vector.broadcast %25 : vector<8x1xf32> to vector<8x8xf32>
    %27 = arith.mulf %22, %26 : vector<8x8xf32>
    %cst_11 = arith.constant dense<0.000000e+00> : vector<8x8xf32>
    %28 = tpu.matmul %27, %14, %cst_11 {dimension_numbers = #tpu.dot_dimension_numbers<[1], [0], [0], [1], [0, 0, 1, 1], [], []>} : vector<8x8xf32>, vector<8x8xf32>, vector<8x8xf32> -> vector<8x8xf32>
    %29 = arith.truncf %28 : vector<8x8xf32> to vector<8x8xbf16>
    %c0_12 = arith.constant 0 : index
    %c0_13 = arith.constant 0 : index
    %c0_14 = arith.constant 0 : index
    %30 = vector.load %arg4[%c0_12, %c0_13, %c0_14] : memref<16x8x128xbf16, #tpu.memory_space<vmem>>, vector<1x8x128xbf16>
    %31 = vector.shape_cast %30 : vector<1x8x128xbf16> to vector<8x128xbf16>
    %cst_15 = arith.constant dense<0.000000e+00> : vector<8x128xf32>
    %32 = tpu.matmul %29, %31, %cst_15 {dimension_numbers = #tpu.dot_dimension_numbers<[1], [0], [0], [1], [0, 0, 1, 1], [], []>} : vector<8x8xbf16>, vector<8x128xbf16>, vector<8x128xf32> -> vector<8x128xf32>
    %33 = arith.addf %11, %32 : vector<8x128xf32>
    %34 = vector.extract_strided_slice %8 {offsets = [0, 8], sizes = [8, 8], strides = [1, 1]} : vector<8x128xf32> to vector<8x8xf32>
    %35 = vector.extract_strided_slice %9 {offsets = [0, 8], sizes = [8, 8], strides = [1, 1]} : vector<8x128xf32> to vector<8x8xf32>
    %36 = vector.extract_strided_slice %10 {offsets = [0, 8], sizes = [8, 8], strides = [1, 1]} : vector<8x128xf32> to vector<8x8xf32>
    %cst_16 = arith.constant dense<0.000000e+00> : vector<8x8xf32>
    %37 = tpu.matmul %34, %35, %cst_16 {dimension_numbers = #tpu.dot_dimension_numbers<[1], [1], [0], [0], [0, 0, 1, 0], [], []>} : vector<8x8xf32>, vector<8x8xf32>, vector<8x8xf32> -> vector<8x8xf32>
    %cst_17 = arith.constant 0.353553385 : f32
    %38 = vector.broadcast %cst_17 : f32 to vector<8x8xf32>
    %39 = arith.mulf %37, %38 : vector<8x8xf32>
    %cst_18 = arith.constant dense<0xFF800000> : vector<8xf32>
    %40 = vector.multi_reduction <maximumf>, %39, %cst_18 [1] : vector<8x8xf32> to vector<8xf32>
    %41 = vector.shape_cast %40 : vector<8xf32> to vector<8x1xf32>
    %42 = vector.broadcast %41 : vector<8x1xf32> to vector<8x8xf32>
    %43 = arith.subf %39, %42 : vector<8x8xf32>
    %44 = math.exp %43 : vector<8x8xf32>
    %cst_19 = arith.constant dense<0.000000e+00> : vector<8xf32>
    %45 = vector.multi_reduction <add>, %44, %cst_19 [1] : vector<8x8xf32> to vector<8xf32>
    %46 = vector.shape_cast %45 : vector<8xf32> to vector<8x1xf32>
    %47 = tpu.reciprocal %46 {approx = true} : vector<8x1xf32> -> vector<8x1xf32>
    %48 = vector.broadcast %47 : vector<8x1xf32> to vector<8x8xf32>
    %49 = arith.mulf %44, %48 : vector<8x8xf32>
    %cst_20 = arith.constant dense<0.000000e+00> : vector<8x8xf32>
    %50 = tpu.matmul %49, %36, %cst_20 {dimension_numbers = #tpu.dot_dimension_numbers<[1], [0], [0], [1], [0, 0, 1, 1], [], []>} : vector<8x8xf32>, vector<8x8xf32>, vector<8x8xf32> -> vector<8x8xf32>
    %51 = arith.truncf %50 : vector<8x8xf32> to vector<8x8xbf16>
    %c1 = arith.constant 1 : index
    %c0_21 = arith.constant 0 : index
    %c0_22 = arith.constant 0 : index
    %52 = vector.load %arg4[%c1, %c0_21, %c0_22] : memref<16x8x128xbf16, #tpu.memory_space<vmem>>, vector<1x8x128xbf16>
    %53 = vector.shape_cast %52 : vector<1x8x128xbf16> to vector<8x128xbf16>
    %cst_23 = arith.constant dense<0.000000e+00> : vector<8x128xf32>
    %54 = tpu.matmul %51, %53, %cst_23 {dimension_numbers = #tpu.dot_dimension_numbers<[1], [0], [0], [1], [0, 0, 1, 1], [], []>} : vector<8x8xbf16>, vector<8x128xbf16>, vector<8x128xf32> -> vector<8x128xf32>
    %55 = arith.addf %33, %54 : vector<8x128xf32>
    %56 = vector.extract_strided_slice %8 {offsets = [0, 16], sizes = [8, 8], strides = [1, 1]} : vector<8x128xf32> to vector<8x8xf32>
    %57 = vector.extract_strided_slice %9 {offsets = [0, 16], sizes = [8, 8], strides = [1, 1]} : vector<8x128xf32> to vector<8x8xf32>
    %58 = vector.extract_strided_slice %10 {offsets = [0, 16], sizes = [8, 8], strides = [1, 1]} : vector<8x128xf32> to vector<8x8xf32>
    %cst_24 = arith.constant dense<0.000000e+00> : vector<8x8xf32>
    %59 = tpu.matmul %56, %57, %cst_24 {dimension_numbers = #tpu.dot_dimension_numbers<[1], [1], [0], [0], [0, 0, 1, 0], [], []>} : vector<8x8xf32>, vector<8x8xf32>, vector<8x8xf32> -> vector<8x8xf32>
    %cst_25 = arith.constant 0.353553385 : f32
    %60 = vector.broadcast %cst_25 : f32 to vector<8x8xf32>
    %61 = arith.mulf %59, %60 : vector<8x8xf32>
    %cst_26 = arith.constant dense<0xFF800000> : vector<8xf32>
    %62 = vector.multi_reduction <maximumf>, %61, %cst_26 [1] : vector<8x8xf32> to vector<8xf32>
    %63 = vector.shape_cast %62 : vector<8xf32> to vector<8x1xf32>
    %64 = vector.broadcast %63 : vector<8x1xf32> to vector<8x8xf32>
    %65 = arith.subf %61, %64 : vector<8x8xf32>
    %66 = math.exp %65 : vector<8x8xf32>
    %cst_27 = arith.constant dense<0.000000e+00> : vector<8xf32>
    %67 = vector.multi_reduction <add>, %66, %cst_27 [1] : vector<8x8xf32> to vector<8xf32>
    %68 = vector.shape_cast %67 : vector<8xf32> to vector<8x1xf32>
    %69 = tpu.reciprocal %68 {approx = true} : vector<8x1xf32> -> vector<8x1xf32>
    %70 = vector.broadcast %69 : vector<8x1xf32> to vector<8x8xf32>
    %71 = arith.mulf %66, %70 : vector<8x8xf32>
    %cst_28 = arith.constant dense<0.000000e+00> : vector<8x8xf32>
    %72 = tpu.matmul %71, %58, %cst_28 {dimension_numbers = #tpu.dot_dimension_numbers<[1], [0], [0], [1], [0, 0, 1, 1], [], []>} : vector<8x8xf32>, vector<8x8xf32>, vector<8x8xf32> -> vector<8x8xf32>
    %73 = arith.truncf %72 : vector<8x8xf32> to vector<8x8xbf16>
    %c2 = arith.constant 2 : index
    %c0_29 = arith.constant 0 : index
    %c0_30 = arith.constant 0 : index
    %74 = vector.load %arg4[%c2, %c0_29, %c0_30] : memref<16x8x128xbf16, #tpu.memory_space<vmem>>, vector<1x8x128xbf16>
    %75 = vector.shape_cast %74 : vector<1x8x128xbf16> to vector<8x128xbf16>
    %cst_31 = arith.constant dense<0.000000e+00> : vector<8x128xf32>
    %76 = tpu.matmul %73, %75, %cst_31 {dimension_numbers = #tpu.dot_dimension_numbers<[1], [0], [0], [1], [0, 0, 1, 1], [], []>} : vector<8x8xbf16>, vector<8x128xbf16>, vector<8x128xf32> -> vector<8x128xf32>
    %77 = arith.addf %55, %76 : vector<8x128xf32>
    %78 = vector.extract_strided_slice %8 {offsets = [0, 24], sizes = [8, 8], strides = [1, 1]} : vector<8x128xf32> to vector<8x8xf32>
    %79 = vector.extract_strided_slice %9 {offsets = [0, 24], sizes = [8, 8], strides = [1, 1]} : vector<8x128xf32> to vector<8x8xf32>
    %80 = vector.extract_strided_slice %10 {offsets = [0, 24], sizes = [8, 8], strides = [1, 1]} : vector<8x128xf32> to vector<8x8xf32>
    %cst_32 = arith.constant dense<0.000000e+00> : vector<8x8xf32>
    %81 = tpu.matmul %78, %79, %cst_32 {dimension_numbers = #tpu.dot_dimension_numbers<[1], [1], [0], [0], [0, 0, 1, 0], [], []>} : vector<8x8xf32>, vector<8x8xf32>, vector<8x8xf32> -> vector<8x8xf32>
    %cst_33 = arith.constant 0.353553385 : f32
    %82 = vector.broadcast %cst_33 : f32 to vector<8x8xf32>
    %83 = arith.mulf %81, %82 : vector<8x8xf32>
    %cst_34 = arith.constant dense<0xFF800000> : vector<8xf32>
    %84 = vector.multi_reduction <maximumf>, %83, %cst_34 [1] : vector<8x8xf32> to vector<8xf32>
    %85 = vector.shape_cast %84 : vector<8xf32> to vector<8x1xf32>
    %86 = vector.broadcast %85 : vector<8x1xf32> to vector<8x8xf32>
    %87 = arith.subf %83, %86 : vector<8x8xf32>
    %88 = math.exp %87 : vector<8x8xf32>
    %cst_35 = arith.constant dense<0.000000e+00> : vector<8xf32>
    %89 = vector.multi_reduction <add>, %88, %cst_35 [1] : vector<8x8xf32> to vector<8xf32>
    %90 = vector.shape_cast %89 : vector<8xf32> to vector<8x1xf32>
    %91 = tpu.reciprocal %90 {approx = true} : vector<8x1xf32> -> vector<8x1xf32>
    %92 = vector.broadcast %91 : vector<8x1xf32> to vector<8x8xf32>
    %93 = arith.mulf %88, %92 : vector<8x8xf32>
    %cst_36 = arith.constant dense<0.000000e+00> : vector<8x8xf32>
    %94 = tpu.matmul %93, %80, %cst_36 {dimension_numbers = #tpu.dot_dimension_numbers<[1], [0], [0], [1], [0, 0, 1, 1], [], []>} : vector<8x8xf32>, vector<8x8xf32>, vector<8x8xf32> -> vector<8x8xf32>
    %95 = arith.truncf %94 : vector<8x8xf32> to vector<8x8xbf16>
    %c3 = arith.constant 3 : index
    %c0_37 = arith.constant 0 : index
    %c0_38 = arith.constant 0 : index
    %96 = vector.load %arg4[%c3, %c0_37, %c0_38] : memref<16x8x128xbf16, #tpu.memory_space<vmem>>, vector<1x8x128xbf16>
    %97 = vector.shape_cast %96 : vector<1x8x128xbf16> to vector<8x128xbf16>
    %cst_39 = arith.constant dense<0.000000e+00> : vector<8x128xf32>
    %98 = tpu.matmul %95, %97, %cst_39 {dimension_numbers = #tpu.dot_dimension_numbers<[1], [0], [0], [1], [0, 0, 1, 1], [], []>} : vector<8x8xbf16>, vector<8x128xbf16>, vector<8x128xf32> -> vector<8x128xf32>
    %99 = arith.addf %77, %98 : vector<8x128xf32>
    %100 = vector.extract_strided_slice %8 {offsets = [0, 32], sizes = [8, 8], strides = [1, 1]} : vector<8x128xf32> to vector<8x8xf32>
    %101 = vector.extract_strided_slice %9 {offsets = [0, 32], sizes = [8, 8], strides = [1, 1]} : vector<8x128xf32> to vector<8x8xf32>
    %102 = vector.extract_strided_slice %10 {offsets = [0, 32], sizes = [8, 8], strides = [1, 1]} : vector<8x128xf32> to vector<8x8xf32>
    %cst_40 = arith.constant dense<0.000000e+00> : vector<8x8xf32>
    %103 = tpu.matmul %100, %101, %cst_40 {dimension_numbers = #tpu.dot_dimension_numbers<[1], [1], [0], [0], [0, 0, 1, 0], [], []>} : vector<8x8xf32>, vector<8x8xf32>, vector<8x8xf32> -> vector<8x8xf32>
    %cst_41 = arith.constant 0.353553385 : f32
    %104 = vector.broadcast %cst_41 : f32 to vector<8x8xf32>
    %105 = arith.mulf %103, %104 : vector<8x8xf32>
    %cst_42 = arith.constant dense<0xFF800000> : vector<8xf32>
    %106 = vector.multi_reduction <maximumf>, %105, %cst_42 [1] : vector<8x8xf32> to vector<8xf32>
    %107 = vector.shape_cast %106 : vector<8xf32> to vector<8x1xf32>
    %108 = vector.broadcast %107 : vector<8x1xf32> to vector<8x8xf32>
    %109 = arith.subf %105, %108 : vector<8x8xf32>
    %110 = math.exp %109 : vector<8x8xf32>
    %cst_43 = arith.constant dense<0.000000e+00> : vector<8xf32>
    %111 = vector.multi_reduction <add>, %110, %cst_43 [1] : vector<8x8xf32> to vector<8xf32>
    %112 = vector.shape_cast %111 : vector<8xf32> to vector<8x1xf32>
    %113 = tpu.reciprocal %112 {approx = true} : vector<8x1xf32> -> vector<8x1xf32>
    %114 = vector.broadcast %113 : vector<8x1xf32> to vector<8x8xf32>
    %115 = arith.mulf %110, %114 : vector<8x8xf32>
    %cst_44 = arith.constant dense<0.000000e+00> : vector<8x8xf32>
    %116 = tpu.matmul %115, %102, %cst_44 {dimension_numbers = #tpu.dot_dimension_numbers<[1], [0], [0], [1], [0, 0, 1, 1], [], []>} : vector<8x8xf32>, vector<8x8xf32>, vector<8x8xf32> -> vector<8x8xf32>
    %117 = arith.truncf %116 : vector<8x8xf32> to vector<8x8xbf16>
    %c4 = arith.constant 4 : index
    %c0_45 = arith.constant 0 : index
    %c0_46 = arith.constant 0 : index
    %118 = vector.load %arg4[%c4, %c0_45, %c0_46] : memref<16x8x128xbf16, #tpu.memory_space<vmem>>, vector<1x8x128xbf16>
    %119 = vector.shape_cast %118 : vector<1x8x128xbf16> to vector<8x128xbf16>
    %cst_47 = arith.constant dense<0.000000e+00> : vector<8x128xf32>
    %120 = tpu.matmul %117, %119, %cst_47 {dimension_numbers = #tpu.dot_dimension_numbers<[1], [0], [0], [1], [0, 0, 1, 1], [], []>} : vector<8x8xbf16>, vector<8x128xbf16>, vector<8x128xf32> -> vector<8x128xf32>
    %121 = arith.addf %99, %120 : vector<8x128xf32>
    %122 = vector.extract_strided_slice %8 {offsets = [0, 40], sizes = [8, 8], strides = [1, 1]} : vector<8x128xf32> to vector<8x8xf32>
    %123 = vector.extract_strided_slice %9 {offsets = [0, 40], sizes = [8, 8], strides = [1, 1]} : vector<8x128xf32> to vector<8x8xf32>
    %124 = vector.extract_strided_slice %10 {offsets = [0, 40], sizes = [8, 8], strides = [1, 1]} : vector<8x128xf32> to vector<8x8xf32>
    %cst_48 = arith.constant dense<0.000000e+00> : vector<8x8xf32>
    %125 = tpu.matmul %122, %123, %cst_48 {dimension_numbers = #tpu.dot_dimension_numbers<[1], [1], [0], [0], [0, 0, 1, 0], [], []>} : vector<8x8xf32>, vector<8x8xf32>, vector<8x8xf32> -> vector<8x8xf32>
    %cst_49 = arith.constant 0.353553385 : f32
    %126 = vector.broadcast %cst_49 : f32 to vector<8x8xf32>
    %127 = arith.mulf %125, %126 : vector<8x8xf32>
    %cst_50 = arith.constant dense<0xFF800000> : vector<8xf32>
    %128 = vector.multi_reduction <maximumf>, %127, %cst_50 [1] : vector<8x8xf32> to vector<8xf32>
    %129 = vector.shape_cast %128 : vector<8xf32> to vector<8x1xf32>
    %130 = vector.broadcast %129 : vector<8x1xf32> to vector<8x8xf32>
    %131 = arith.subf %127, %130 : vector<8x8xf32>
    %132 = math.exp %131 : vector<8x8xf32>
    %cst_51 = arith.constant dense<0.000000e+00> : vector<8xf32>
    %133 = vector.multi_reduction <add>, %132, %cst_51 [1] : vector<8x8xf32> to vector<8xf32>
    %134 = vector.shape_cast %133 : vector<8xf32> to vector<8x1xf32>
    %135 = tpu.reciprocal %134 {approx = true} : vector<8x1xf32> -> vector<8x1xf32>
    %136 = vector.broadcast %135 : vector<8x1xf32> to vector<8x8xf32>
    %137 = arith.mulf %132, %136 : vector<8x8xf32>
    %cst_52 = arith.constant dense<0.000000e+00> : vector<8x8xf32>
    %138 = tpu.matmul %137, %124, %cst_52 {dimension_numbers = #tpu.dot_dimension_numbers<[1], [0], [0], [1], [0, 0, 1, 1], [], []>} : vector<8x8xf32>, vector<8x8xf32>, vector<8x8xf32> -> vector<8x8xf32>
    %139 = arith.truncf %138 : vector<8x8xf32> to vector<8x8xbf16>
    %c5 = arith.constant 5 : index
    %c0_53 = arith.constant 0 : index
    %c0_54 = arith.constant 0 : index
    %140 = vector.load %arg4[%c5, %c0_53, %c0_54] : memref<16x8x128xbf16, #tpu.memory_space<vmem>>, vector<1x8x128xbf16>
    %141 = vector.shape_cast %140 : vector<1x8x128xbf16> to vector<8x128xbf16>
    %cst_55 = arith.constant dense<0.000000e+00> : vector<8x128xf32>
    %142 = tpu.matmul %139, %141, %cst_55 {dimension_numbers = #tpu.dot_dimension_numbers<[1], [0], [0], [1], [0, 0, 1, 1], [], []>} : vector<8x8xbf16>, vector<8x128xbf16>, vector<8x128xf32> -> vector<8x128xf32>
    %143 = arith.addf %121, %142 : vector<8x128xf32>
    %144 = vector.extract_strided_slice %8 {offsets = [0, 48], sizes = [8, 8], strides = [1, 1]} : vector<8x128xf32> to vector<8x8xf32>
    %145 = vector.extract_strided_slice %9 {offsets = [0, 48], sizes = [8, 8], strides = [1, 1]} : vector<8x128xf32> to vector<8x8xf32>
    %146 = vector.extract_strided_slice %10 {offsets = [0, 48], sizes = [8, 8], strides = [1, 1]} : vector<8x128xf32> to vector<8x8xf32>
    %cst_56 = arith.constant dense<0.000000e+00> : vector<8x8xf32>
    %147 = tpu.matmul %144, %145, %cst_56 {dimension_numbers = #tpu.dot_dimension_numbers<[1], [1], [0], [0], [0, 0, 1, 0], [], []>} : vector<8x8xf32>, vector<8x8xf32>, vector<8x8xf32> -> vector<8x8xf32>
    %cst_57 = arith.constant 0.353553385 : f32
    %148 = vector.broadcast %cst_57 : f32 to vector<8x8xf32>
    %149 = arith.mulf %147, %148 : vector<8x8xf32>
    %cst_58 = arith.constant dense<0xFF800000> : vector<8xf32>
    %150 = vector.multi_reduction <maximumf>, %149, %cst_58 [1] : vector<8x8xf32> to vector<8xf32>
    %151 = vector.shape_cast %150 : vector<8xf32> to vector<8x1xf32>
    %152 = vector.broadcast %151 : vector<8x1xf32> to vector<8x8xf32>
    %153 = arith.subf %149, %152 : vector<8x8xf32>
    %154 = math.exp %153 : vector<8x8xf32>
    %cst_59 = arith.constant dense<0.000000e+00> : vector<8xf32>
    %155 = vector.multi_reduction <add>, %154, %cst_59 [1] : vector<8x8xf32> to vector<8xf32>
    %156 = vector.shape_cast %155 : vector<8xf32> to vector<8x1xf32>
    %157 = tpu.reciprocal %156 {approx = true} : vector<8x1xf32> -> vector<8x1xf32>
    %158 = vector.broadcast %157 : vector<8x1xf32> to vector<8x8xf32>
    %159 = arith.mulf %154, %158 : vector<8x8xf32>
    %cst_60 = arith.constant dense<0.000000e+00> : vector<8x8xf32>
    %160 = tpu.matmul %159, %146, %cst_60 {dimension_numbers = #tpu.dot_dimension_numbers<[1], [0], [0], [1], [0, 0, 1, 1], [], []>} : vector<8x8xf32>, vector<8x8xf32>, vector<8x8xf32> -> vector<8x8xf32>
    %161 = arith.truncf %160 : vector<8x8xf32> to vector<8x8xbf16>
    %c6 = arith.constant 6 : index
    %c0_61 = arith.constant 0 : index
    %c0_62 = arith.constant 0 : index
    %162 = vector.load %arg4[%c6, %c0_61, %c0_62] : memref<16x8x128xbf16, #tpu.memory_space<vmem>>, vector<1x8x128xbf16>
    %163 = vector.shape_cast %162 : vector<1x8x128xbf16> to vector<8x128xbf16>
    %cst_63 = arith.constant dense<0.000000e+00> : vector<8x128xf32>
    %164 = tpu.matmul %161, %163, %cst_63 {dimension_numbers = #tpu.dot_dimension_numbers<[1], [0], [0], [1], [0, 0, 1, 1], [], []>} : vector<8x8xbf16>, vector<8x128xbf16>, vector<8x128xf32> -> vector<8x128xf32>
    %165 = arith.addf %143, %164 : vector<8x128xf32>
    %166 = vector.extract_strided_slice %8 {offsets = [0, 56], sizes = [8, 8], strides = [1, 1]} : vector<8x128xf32> to vector<8x8xf32>
    %167 = vector.extract_strided_slice %9 {offsets = [0, 56], sizes = [8, 8], strides = [1, 1]} : vector<8x128xf32> to vector<8x8xf32>
    %168 = vector.extract_strided_slice %10 {offsets = [0, 56], sizes = [8, 8], strides = [1, 1]} : vector<8x128xf32> to vector<8x8xf32>
    %cst_64 = arith.constant dense<0.000000e+00> : vector<8x8xf32>
    %169 = tpu.matmul %166, %167, %cst_64 {dimension_numbers = #tpu.dot_dimension_numbers<[1], [1], [0], [0], [0, 0, 1, 0], [], []>} : vector<8x8xf32>, vector<8x8xf32>, vector<8x8xf32> -> vector<8x8xf32>
    %cst_65 = arith.constant 0.353553385 : f32
    %170 = vector.broadcast %cst_65 : f32 to vector<8x8xf32>
    %171 = arith.mulf %169, %170 : vector<8x8xf32>
    %cst_66 = arith.constant dense<0xFF800000> : vector<8xf32>
    %172 = vector.multi_reduction <maximumf>, %171, %cst_66 [1] : vector<8x8xf32> to vector<8xf32>
    %173 = vector.shape_cast %172 : vector<8xf32> to vector<8x1xf32>
    %174 = vector.broadcast %173 : vector<8x1xf32> to vector<8x8xf32>
    %175 = arith.subf %171, %174 : vector<8x8xf32>
    %176 = math.exp %175 : vector<8x8xf32>
    %cst_67 = arith.constant dense<0.000000e+00> : vector<8xf32>
    %177 = vector.multi_reduction <add>, %176, %cst_67 [1] : vector<8x8xf32> to vector<8xf32>
    %178 = vector.shape_cast %177 : vector<8xf32> to vector<8x1xf32>
    %179 = tpu.reciprocal %178 {approx = true} : vector<8x1xf32> -> vector<8x1xf32>
    %180 = vector.broadcast %179 : vector<8x1xf32> to vector<8x8xf32>
    %181 = arith.mulf %176, %180 : vector<8x8xf32>
    %cst_68 = arith.constant dense<0.000000e+00> : vector<8x8xf32>
    %182 = tpu.matmul %181, %168, %cst_68 {dimension_numbers = #tpu.dot_dimension_numbers<[1], [0], [0], [1], [0, 0, 1, 1], [], []>} : vector<8x8xf32>, vector<8x8xf32>, vector<8x8xf32> -> vector<8x8xf32>
    %183 = arith.truncf %182 : vector<8x8xf32> to vector<8x8xbf16>
    %c7 = arith.constant 7 : index
    %c0_69 = arith.constant 0 : index
    %c0_70 = arith.constant 0 : index
    %184 = vector.load %arg4[%c7, %c0_69, %c0_70] : memref<16x8x128xbf16, #tpu.memory_space<vmem>>, vector<1x8x128xbf16>
    %185 = vector.shape_cast %184 : vector<1x8x128xbf16> to vector<8x128xbf16>
    %cst_71 = arith.constant dense<0.000000e+00> : vector<8x128xf32>
    %186 = tpu.matmul %183, %185, %cst_71 {dimension_numbers = #tpu.dot_dimension_numbers<[1], [0], [0], [1], [0, 0, 1, 1], [], []>} : vector<8x8xbf16>, vector<8x128xbf16>, vector<8x128xf32> -> vector<8x128xf32>
    %187 = arith.addf %165, %186 : vector<8x128xf32>
    %188 = vector.extract_strided_slice %8 {offsets = [0, 64], sizes = [8, 8], strides = [1, 1]} : vector<8x128xf32> to vector<8x8xf32>
    %189 = vector.extract_strided_slice %9 {offsets = [0, 64], sizes = [8, 8], strides = [1, 1]} : vector<8x128xf32> to vector<8x8xf32>
    %190 = vector.extract_strided_slice %10 {offsets = [0, 64], sizes = [8, 8], strides = [1, 1]} : vector<8x128xf32> to vector<8x8xf32>
    %cst_72 = arith.constant dense<0.000000e+00> : vector<8x8xf32>
    %191 = tpu.matmul %188, %189, %cst_72 {dimension_numbers = #tpu.dot_dimension_numbers<[1], [1], [0], [0], [0, 0, 1, 0], [], []>} : vector<8x8xf32>, vector<8x8xf32>, vector<8x8xf32> -> vector<8x8xf32>
    %cst_73 = arith.constant 0.353553385 : f32
    %192 = vector.broadcast %cst_73 : f32 to vector<8x8xf32>
    %193 = arith.mulf %191, %192 : vector<8x8xf32>
    %cst_74 = arith.constant dense<0xFF800000> : vector<8xf32>
    %194 = vector.multi_reduction <maximumf>, %193, %cst_74 [1] : vector<8x8xf32> to vector<8xf32>
    %195 = vector.shape_cast %194 : vector<8xf32> to vector<8x1xf32>
    %196 = vector.broadcast %195 : vector<8x1xf32> to vector<8x8xf32>
    %197 = arith.subf %193, %196 : vector<8x8xf32>
    %198 = math.exp %197 : vector<8x8xf32>
    %cst_75 = arith.constant dense<0.000000e+00> : vector<8xf32>
    %199 = vector.multi_reduction <add>, %198, %cst_75 [1] : vector<8x8xf32> to vector<8xf32>
    %200 = vector.shape_cast %199 : vector<8xf32> to vector<8x1xf32>
    %201 = tpu.reciprocal %200 {approx = true} : vector<8x1xf32> -> vector<8x1xf32>
    %202 = vector.broadcast %201 : vector<8x1xf32> to vector<8x8xf32>
    %203 = arith.mulf %198, %202 : vector<8x8xf32>
    %cst_76 = arith.constant dense<0.000000e+00> : vector<8x8xf32>
    %204 = tpu.matmul %203, %190, %cst_76 {dimension_numbers = #tpu.dot_dimension_numbers<[1], [0], [0], [1], [0, 0, 1, 1], [], []>} : vector<8x8xf32>, vector<8x8xf32>, vector<8x8xf32> -> vector<8x8xf32>
    %205 = arith.truncf %204 : vector<8x8xf32> to vector<8x8xbf16>
    %c8 = arith.constant 8 : index
    %c0_77 = arith.constant 0 : index
    %c0_78 = arith.constant 0 : index
    %206 = vector.load %arg4[%c8, %c0_77, %c0_78] : memref<16x8x128xbf16, #tpu.memory_space<vmem>>, vector<1x8x128xbf16>
    %207 = vector.shape_cast %206 : vector<1x8x128xbf16> to vector<8x128xbf16>
    %cst_79 = arith.constant dense<0.000000e+00> : vector<8x128xf32>
    %208 = tpu.matmul %205, %207, %cst_79 {dimension_numbers = #tpu.dot_dimension_numbers<[1], [0], [0], [1], [0, 0, 1, 1], [], []>} : vector<8x8xbf16>, vector<8x128xbf16>, vector<8x128xf32> -> vector<8x128xf32>
    %209 = arith.addf %187, %208 : vector<8x128xf32>
    %210 = vector.extract_strided_slice %8 {offsets = [0, 72], sizes = [8, 8], strides = [1, 1]} : vector<8x128xf32> to vector<8x8xf32>
    %211 = vector.extract_strided_slice %9 {offsets = [0, 72], sizes = [8, 8], strides = [1, 1]} : vector<8x128xf32> to vector<8x8xf32>
    %212 = vector.extract_strided_slice %10 {offsets = [0, 72], sizes = [8, 8], strides = [1, 1]} : vector<8x128xf32> to vector<8x8xf32>
    %cst_80 = arith.constant dense<0.000000e+00> : vector<8x8xf32>
    %213 = tpu.matmul %210, %211, %cst_80 {dimension_numbers = #tpu.dot_dimension_numbers<[1], [1], [0], [0], [0, 0, 1, 0], [], []>} : vector<8x8xf32>, vector<8x8xf32>, vector<8x8xf32> -> vector<8x8xf32>
    %cst_81 = arith.constant 0.353553385 : f32
    %214 = vector.broadcast %cst_81 : f32 to vector<8x8xf32>
    %215 = arith.mulf %213, %214 : vector<8x8xf32>
    %cst_82 = arith.constant dense<0xFF800000> : vector<8xf32>
    %216 = vector.multi_reduction <maximumf>, %215, %cst_82 [1] : vector<8x8xf32> to vector<8xf32>
    %217 = vector.shape_cast %216 : vector<8xf32> to vector<8x1xf32>
    %218 = vector.broadcast %217 : vector<8x1xf32> to vector<8x8xf32>
    %219 = arith.subf %215, %218 : vector<8x8xf32>
    %220 = math.exp %219 : vector<8x8xf32>
    %cst_83 = arith.constant dense<0.000000e+00> : vector<8xf32>
    %221 = vector.multi_reduction <add>, %220, %cst_83 [1] : vector<8x8xf32> to vector<8xf32>
    %222 = vector.shape_cast %221 : vector<8xf32> to vector<8x1xf32>
    %223 = tpu.reciprocal %222 {approx = true} : vector<8x1xf32> -> vector<8x1xf32>
    %224 = vector.broadcast %223 : vector<8x1xf32> to vector<8x8xf32>
    %225 = arith.mulf %220, %224 : vector<8x8xf32>
    %cst_84 = arith.constant dense<0.000000e+00> : vector<8x8xf32>
    %226 = tpu.matmul %225, %212, %cst_84 {dimension_numbers = #tpu.dot_dimension_numbers<[1], [0], [0], [1], [0, 0, 1, 1], [], []>} : vector<8x8xf32>, vector<8x8xf32>, vector<8x8xf32> -> vector<8x8xf32>
    %227 = arith.truncf %226 : vector<8x8xf32> to vector<8x8xbf16>
    %c9 = arith.constant 9 : index
    %c0_85 = arith.constant 0 : index
    %c0_86 = arith.constant 0 : index
    %228 = vector.load %arg4[%c9, %c0_85, %c0_86] : memref<16x8x128xbf16, #tpu.memory_space<vmem>>, vector<1x8x128xbf16>
    %229 = vector.shape_cast %228 : vector<1x8x128xbf16> to vector<8x128xbf16>
    %cst_87 = arith.constant dense<0.000000e+00> : vector<8x128xf32>
    %230 = tpu.matmul %227, %229, %cst_87 {dimension_numbers = #tpu.dot_dimension_numbers<[1], [0], [0], [1], [0, 0, 1, 1], [], []>} : vector<8x8xbf16>, vector<8x128xbf16>, vector<8x128xf32> -> vector<8x128xf32>
    %231 = arith.addf %209, %230 : vector<8x128xf32>
    %232 = vector.extract_strided_slice %8 {offsets = [0, 80], sizes = [8, 8], strides = [1, 1]} : vector<8x128xf32> to vector<8x8xf32>
    %233 = vector.extract_strided_slice %9 {offsets = [0, 80], sizes = [8, 8], strides = [1, 1]} : vector<8x128xf32> to vector<8x8xf32>
    %234 = vector.extract_strided_slice %10 {offsets = [0, 80], sizes = [8, 8], strides = [1, 1]} : vector<8x128xf32> to vector<8x8xf32>
    %cst_88 = arith.constant dense<0.000000e+00> : vector<8x8xf32>
    %235 = tpu.matmul %232, %233, %cst_88 {dimension_numbers = #tpu.dot_dimension_numbers<[1], [1], [0], [0], [0, 0, 1, 0], [], []>} : vector<8x8xf32>, vector<8x8xf32>, vector<8x8xf32> -> vector<8x8xf32>
    %cst_89 = arith.constant 0.353553385 : f32
    %236 = vector.broadcast %cst_89 : f32 to vector<8x8xf32>
    %237 = arith.mulf %235, %236 : vector<8x8xf32>
    %cst_90 = arith.constant dense<0xFF800000> : vector<8xf32>
    %238 = vector.multi_reduction <maximumf>, %237, %cst_90 [1] : vector<8x8xf32> to vector<8xf32>
    %239 = vector.shape_cast %238 : vector<8xf32> to vector<8x1xf32>
    %240 = vector.broadcast %239 : vector<8x1xf32> to vector<8x8xf32>
    %241 = arith.subf %237, %240 : vector<8x8xf32>
    %242 = math.exp %241 : vector<8x8xf32>
    %cst_91 = arith.constant dense<0.000000e+00> : vector<8xf32>
    %243 = vector.multi_reduction <add>, %242, %cst_91 [1] : vector<8x8xf32> to vector<8xf32>
    %244 = vector.shape_cast %243 : vector<8xf32> to vector<8x1xf32>
    %245 = tpu.reciprocal %244 {approx = true} : vector<8x1xf32> -> vector<8x1xf32>
    %246 = vector.broadcast %245 : vector<8x1xf32> to vector<8x8xf32>
    %247 = arith.mulf %242, %246 : vector<8x8xf32>
    %cst_92 = arith.constant dense<0.000000e+00> : vector<8x8xf32>
    %248 = tpu.matmul %247, %234, %cst_92 {dimension_numbers = #tpu.dot_dimension_numbers<[1], [0], [0], [1], [0, 0, 1, 1], [], []>} : vector<8x8xf32>, vector<8x8xf32>, vector<8x8xf32> -> vector<8x8xf32>
    %249 = arith.truncf %248 : vector<8x8xf32> to vector<8x8xbf16>
    %c10 = arith.constant 10 : index
    %c0_93 = arith.constant 0 : index
    %c0_94 = arith.constant 0 : index
    %250 = vector.load %arg4[%c10, %c0_93, %c0_94] : memref<16x8x128xbf16, #tpu.memory_space<vmem>>, vector<1x8x128xbf16>
    %251 = vector.shape_cast %250 : vector<1x8x128xbf16> to vector<8x128xbf16>
    %cst_95 = arith.constant dense<0.000000e+00> : vector<8x128xf32>
    %252 = tpu.matmul %249, %251, %cst_95 {dimension_numbers = #tpu.dot_dimension_numbers<[1], [0], [0], [1], [0, 0, 1, 1], [], []>} : vector<8x8xbf16>, vector<8x128xbf16>, vector<8x128xf32> -> vector<8x128xf32>
    %253 = arith.addf %231, %252 : vector<8x128xf32>
    %254 = vector.extract_strided_slice %8 {offsets = [0, 88], sizes = [8, 8], strides = [1, 1]} : vector<8x128xf32> to vector<8x8xf32>
    %255 = vector.extract_strided_slice %9 {offsets = [0, 88], sizes = [8, 8], strides = [1, 1]} : vector<8x128xf32> to vector<8x8xf32>
    %256 = vector.extract_strided_slice %10 {offsets = [0, 88], sizes = [8, 8], strides = [1, 1]} : vector<8x128xf32> to vector<8x8xf32>
    %cst_96 = arith.constant dense<0.000000e+00> : vector<8x8xf32>
    %257 = tpu.matmul %254, %255, %cst_96 {dimension_numbers = #tpu.dot_dimension_numbers<[1], [1], [0], [0], [0, 0, 1, 0], [], []>} : vector<8x8xf32>, vector<8x8xf32>, vector<8x8xf32> -> vector<8x8xf32>
    %cst_97 = arith.constant 0.353553385 : f32
    %258 = vector.broadcast %cst_97 : f32 to vector<8x8xf32>
    %259 = arith.mulf %257, %258 : vector<8x8xf32>
    %cst_98 = arith.constant dense<0xFF800000> : vector<8xf32>
    %260 = vector.multi_reduction <maximumf>, %259, %cst_98 [1] : vector<8x8xf32> to vector<8xf32>
    %261 = vector.shape_cast %260 : vector<8xf32> to vector<8x1xf32>
    %262 = vector.broadcast %261 : vector<8x1xf32> to vector<8x8xf32>
    %263 = arith.subf %259, %262 : vector<8x8xf32>
    %264 = math.exp %263 : vector<8x8xf32>
    %cst_99 = arith.constant dense<0.000000e+00> : vector<8xf32>
    %265 = vector.multi_reduction <add>, %264, %cst_99 [1] : vector<8x8xf32> to vector<8xf32>
    %266 = vector.shape_cast %265 : vector<8xf32> to vector<8x1xf32>
    %267 = tpu.reciprocal %266 {approx = true} : vector<8x1xf32> -> vector<8x1xf32>
    %268 = vector.broadcast %267 : vector<8x1xf32> to vector<8x8xf32>
    %269 = arith.mulf %264, %268 : vector<8x8xf32>
    %cst_100 = arith.constant dense<0.000000e+00> : vector<8x8xf32>
    %270 = tpu.matmul %269, %256, %cst_100 {dimension_numbers = #tpu.dot_dimension_numbers<[1], [0], [0], [1], [0, 0, 1, 1], [], []>} : vector<8x8xf32>, vector<8x8xf32>, vector<8x8xf32> -> vector<8x8xf32>
    %271 = arith.truncf %270 : vector<8x8xf32> to vector<8x8xbf16>
    %c11 = arith.constant 11 : index
    %c0_101 = arith.constant 0 : index
    %c0_102 = arith.constant 0 : index
    %272 = vector.load %arg4[%c11, %c0_101, %c0_102] : memref<16x8x128xbf16, #tpu.memory_space<vmem>>, vector<1x8x128xbf16>
    %273 = vector.shape_cast %272 : vector<1x8x128xbf16> to vector<8x128xbf16>
    %cst_103 = arith.constant dense<0.000000e+00> : vector<8x128xf32>
    %274 = tpu.matmul %271, %273, %cst_103 {dimension_numbers = #tpu.dot_dimension_numbers<[1], [0], [0], [1], [0, 0, 1, 1], [], []>} : vector<8x8xbf16>, vector<8x128xbf16>, vector<8x128xf32> -> vector<8x128xf32>
    %275 = arith.addf %253, %274 : vector<8x128xf32>
    %276 = vector.extract_strided_slice %8 {offsets = [0, 96], sizes = [8, 8], strides = [1, 1]} : vector<8x128xf32> to vector<8x8xf32>
    %277 = vector.extract_strided_slice %9 {offsets = [0, 96], sizes = [8, 8], strides = [1, 1]} : vector<8x128xf32> to vector<8x8xf32>
    %278 = vector.extract_strided_slice %10 {offsets = [0, 96], sizes = [8, 8], strides = [1, 1]} : vector<8x128xf32> to vector<8x8xf32>
    %cst_104 = arith.constant dense<0.000000e+00> : vector<8x8xf32>
    %279 = tpu.matmul %276, %277, %cst_104 {dimension_numbers = #tpu.dot_dimension_numbers<[1], [1], [0], [0], [0, 0, 1, 0], [], []>} : vector<8x8xf32>, vector<8x8xf32>, vector<8x8xf32> -> vector<8x8xf32>
    %cst_105 = arith.constant 0.353553385 : f32
    %280 = vector.broadcast %cst_105 : f32 to vector<8x8xf32>
    %281 = arith.mulf %279, %280 : vector<8x8xf32>
    %cst_106 = arith.constant dense<0xFF800000> : vector<8xf32>
    %282 = vector.multi_reduction <maximumf>, %281, %cst_106 [1] : vector<8x8xf32> to vector<8xf32>
    %283 = vector.shape_cast %282 : vector<8xf32> to vector<8x1xf32>
    %284 = vector.broadcast %283 : vector<8x1xf32> to vector<8x8xf32>
    %285 = arith.subf %281, %284 : vector<8x8xf32>
    %286 = math.exp %285 : vector<8x8xf32>
    %cst_107 = arith.constant dense<0.000000e+00> : vector<8xf32>
    %287 = vector.multi_reduction <add>, %286, %cst_107 [1] : vector<8x8xf32> to vector<8xf32>
    %288 = vector.shape_cast %287 : vector<8xf32> to vector<8x1xf32>
    %289 = tpu.reciprocal %288 {approx = true} : vector<8x1xf32> -> vector<8x1xf32>
    %290 = vector.broadcast %289 : vector<8x1xf32> to vector<8x8xf32>
    %291 = arith.mulf %286, %290 : vector<8x8xf32>
    %cst_108 = arith.constant dense<0.000000e+00> : vector<8x8xf32>
    %292 = tpu.matmul %291, %278, %cst_108 {dimension_numbers = #tpu.dot_dimension_numbers<[1], [0], [0], [1], [0, 0, 1, 1], [], []>} : vector<8x8xf32>, vector<8x8xf32>, vector<8x8xf32> -> vector<8x8xf32>
    %293 = arith.truncf %292 : vector<8x8xf32> to vector<8x8xbf16>
    %c12 = arith.constant 12 : index
    %c0_109 = arith.constant 0 : index
    %c0_110 = arith.constant 0 : index
    %294 = vector.load %arg4[%c12, %c0_109, %c0_110] : memref<16x8x128xbf16, #tpu.memory_space<vmem>>, vector<1x8x128xbf16>
    %295 = vector.shape_cast %294 : vector<1x8x128xbf16> to vector<8x128xbf16>
    %cst_111 = arith.constant dense<0.000000e+00> : vector<8x128xf32>
    %296 = tpu.matmul %293, %295, %cst_111 {dimension_numbers = #tpu.dot_dimension_numbers<[1], [0], [0], [1], [0, 0, 1, 1], [], []>} : vector<8x8xbf16>, vector<8x128xbf16>, vector<8x128xf32> -> vector<8x128xf32>
    %297 = arith.addf %275, %296 : vector<8x128xf32>
    %298 = vector.extract_strided_slice %8 {offsets = [0, 104], sizes = [8, 8], strides = [1, 1]} : vector<8x128xf32> to vector<8x8xf32>
    %299 = vector.extract_strided_slice %9 {offsets = [0, 104], sizes = [8, 8], strides = [1, 1]} : vector<8x128xf32> to vector<8x8xf32>
    %300 = vector.extract_strided_slice %10 {offsets = [0, 104], sizes = [8, 8], strides = [1, 1]} : vector<8x128xf32> to vector<8x8xf32>
    %cst_112 = arith.constant dense<0.000000e+00> : vector<8x8xf32>
    %301 = tpu.matmul %298, %299, %cst_112 {dimension_numbers = #tpu.dot_dimension_numbers<[1], [1], [0], [0], [0, 0, 1, 0], [], []>} : vector<8x8xf32>, vector<8x8xf32>, vector<8x8xf32> -> vector<8x8xf32>
    %cst_113 = arith.constant 0.353553385 : f32
    %302 = vector.broadcast %cst_113 : f32 to vector<8x8xf32>
    %303 = arith.mulf %301, %302 : vector<8x8xf32>
    %cst_114 = arith.constant dense<0xFF800000> : vector<8xf32>
    %304 = vector.multi_reduction <maximumf>, %303, %cst_114 [1] : vector<8x8xf32> to vector<8xf32>
    %305 = vector.shape_cast %304 : vector<8xf32> to vector<8x1xf32>
    %306 = vector.broadcast %305 : vector<8x1xf32> to vector<8x8xf32>
    %307 = arith.subf %303, %306 : vector<8x8xf32>
    %308 = math.exp %307 : vector<8x8xf32>
    %cst_115 = arith.constant dense<0.000000e+00> : vector<8xf32>
    %309 = vector.multi_reduction <add>, %308, %cst_115 [1] : vector<8x8xf32> to vector<8xf32>
    %310 = vector.shape_cast %309 : vector<8xf32> to vector<8x1xf32>
    %311 = tpu.reciprocal %310 {approx = true} : vector<8x1xf32> -> vector<8x1xf32>
    %312 = vector.broadcast %311 : vector<8x1xf32> to vector<8x8xf32>
    %313 = arith.mulf %308, %312 : vector<8x8xf32>
    %cst_116 = arith.constant dense<0.000000e+00> : vector<8x8xf32>
    %314 = tpu.matmul %313, %300, %cst_116 {dimension_numbers = #tpu.dot_dimension_numbers<[1], [0], [0], [1], [0, 0, 1, 1], [], []>} : vector<8x8xf32>, vector<8x8xf32>, vector<8x8xf32> -> vector<8x8xf32>
    %315 = arith.truncf %314 : vector<8x8xf32> to vector<8x8xbf16>
    %c13 = arith.constant 13 : index
    %c0_117 = arith.constant 0 : index
    %c0_118 = arith.constant 0 : index
    %316 = vector.load %arg4[%c13, %c0_117, %c0_118] : memref<16x8x128xbf16, #tpu.memory_space<vmem>>, vector<1x8x128xbf16>
    %317 = vector.shape_cast %316 : vector<1x8x128xbf16> to vector<8x128xbf16>
    %cst_119 = arith.constant dense<0.000000e+00> : vector<8x128xf32>
    %318 = tpu.matmul %315, %317, %cst_119 {dimension_numbers = #tpu.dot_dimension_numbers<[1], [0], [0], [1], [0, 0, 1, 1], [], []>} : vector<8x8xbf16>, vector<8x128xbf16>, vector<8x128xf32> -> vector<8x128xf32>
    %319 = arith.addf %297, %318 : vector<8x128xf32>
    %320 = vector.extract_strided_slice %8 {offsets = [0, 112], sizes = [8, 8], strides = [1, 1]} : vector<8x128xf32> to vector<8x8xf32>
    %321 = vector.extract_strided_slice %9 {offsets = [0, 112], sizes = [8, 8], strides = [1, 1]} : vector<8x128xf32> to vector<8x8xf32>
    %322 = vector.extract_strided_slice %10 {offsets = [0, 112], sizes = [8, 8], strides = [1, 1]} : vector<8x128xf32> to vector<8x8xf32>
    %cst_120 = arith.constant dense<0.000000e+00> : vector<8x8xf32>
    %323 = tpu.matmul %320, %321, %cst_120 {dimension_numbers = #tpu.dot_dimension_numbers<[1], [1], [0], [0], [0, 0, 1, 0], [], []>} : vector<8x8xf32>, vector<8x8xf32>, vector<8x8xf32> -> vector<8x8xf32>
    %cst_121 = arith.constant 0.353553385 : f32
    %324 = vector.broadcast %cst_121 : f32 to vector<8x8xf32>
    %325 = arith.mulf %323, %324 : vector<8x8xf32>
    %cst_122 = arith.constant dense<0xFF800000> : vector<8xf32>
    %326 = vector.multi_reduction <maximumf>, %325, %cst_122 [1] : vector<8x8xf32> to vector<8xf32>
    %327 = vector.shape_cast %326 : vector<8xf32> to vector<8x1xf32>
    %328 = vector.broadcast %327 : vector<8x1xf32> to vector<8x8xf32>
    %329 = arith.subf %325, %328 : vector<8x8xf32>
    %330 = math.exp %329 : vector<8x8xf32>
    %cst_123 = arith.constant dense<0.000000e+00> : vector<8xf32>
    %331 = vector.multi_reduction <add>, %330, %cst_123 [1] : vector<8x8xf32> to vector<8xf32>
    %332 = vector.shape_cast %331 : vector<8xf32> to vector<8x1xf32>
    %333 = tpu.reciprocal %332 {approx = true} : vector<8x1xf32> -> vector<8x1xf32>
    %334 = vector.broadcast %333 : vector<8x1xf32> to vector<8x8xf32>
    %335 = arith.mulf %330, %334 : vector<8x8xf32>
    %cst_124 = arith.constant dense<0.000000e+00> : vector<8x8xf32>
    %336 = tpu.matmul %335, %322, %cst_124 {dimension_numbers = #tpu.dot_dimension_numbers<[1], [0], [0], [1], [0, 0, 1, 1], [], []>} : vector<8x8xf32>, vector<8x8xf32>, vector<8x8xf32> -> vector<8x8xf32>
    %337 = arith.truncf %336 : vector<8x8xf32> to vector<8x8xbf16>
    %c14 = arith.constant 14 : index
    %c0_125 = arith.constant 0 : index
    %c0_126 = arith.constant 0 : index
    %338 = vector.load %arg4[%c14, %c0_125, %c0_126] : memref<16x8x128xbf16, #tpu.memory_space<vmem>>, vector<1x8x128xbf16>
    %339 = vector.shape_cast %338 : vector<1x8x128xbf16> to vector<8x128xbf16>
    %cst_127 = arith.constant dense<0.000000e+00> : vector<8x128xf32>
    %340 = tpu.matmul %337, %339, %cst_127 {dimension_numbers = #tpu.dot_dimension_numbers<[1], [0], [0], [1], [0, 0, 1, 1], [], []>} : vector<8x8xbf16>, vector<8x128xbf16>, vector<8x128xf32> -> vector<8x128xf32>
    %341 = arith.addf %319, %340 : vector<8x128xf32>
    %342 = vector.extract_strided_slice %8 {offsets = [0, 120], sizes = [8, 8], strides = [1, 1]} : vector<8x128xf32> to vector<8x8xf32>
    %343 = vector.extract_strided_slice %9 {offsets = [0, 120], sizes = [8, 8], strides = [1, 1]} : vector<8x128xf32> to vector<8x8xf32>
    %344 = vector.extract_strided_slice %10 {offsets = [0, 120], sizes = [8, 8], strides = [1, 1]} : vector<8x128xf32> to vector<8x8xf32>
    %cst_128 = arith.constant dense<0.000000e+00> : vector<8x8xf32>
    %345 = tpu.matmul %342, %343, %cst_128 {dimension_numbers = #tpu.dot_dimension_numbers<[1], [1], [0], [0], [0, 0, 1, 0], [], []>} : vector<8x8xf32>, vector<8x8xf32>, vector<8x8xf32> -> vector<8x8xf32>
    %cst_129 = arith.constant 0.353553385 : f32
    %346 = vector.broadcast %cst_129 : f32 to vector<8x8xf32>
    %347 = arith.mulf %345, %346 : vector<8x8xf32>
    %cst_130 = arith.constant dense<0xFF800000> : vector<8xf32>
    %348 = vector.multi_reduction <maximumf>, %347, %cst_130 [1] : vector<8x8xf32> to vector<8xf32>
    %349 = vector.shape_cast %348 : vector<8xf32> to vector<8x1xf32>
    %350 = vector.broadcast %349 : vector<8x1xf32> to vector<8x8xf32>
    %351 = arith.subf %347, %350 : vector<8x8xf32>
    %352 = math.exp %351 : vector<8x8xf32>
    %cst_131 = arith.constant dense<0.000000e+00> : vector<8xf32>
    %353 = vector.multi_reduction <add>, %352, %cst_131 [1] : vector<8x8xf32> to vector<8xf32>
    %354 = vector.shape_cast %353 : vector<8xf32> to vector<8x1xf32>
    %355 = tpu.reciprocal %354 {approx = true} : vector<8x1xf32> -> vector<8x1xf32>
    %356 = vector.broadcast %355 : vector<8x1xf32> to vector<8x8xf32>
    %357 = arith.mulf %352, %356 : vector<8x8xf32>
    %cst_132 = arith.constant dense<0.000000e+00> : vector<8x8xf32>
    %358 = tpu.matmul %357, %344, %cst_132 {dimension_numbers = #tpu.dot_dimension_numbers<[1], [0], [0], [1], [0, 0, 1, 1], [], []>} : vector<8x8xf32>, vector<8x8xf32>, vector<8x8xf32> -> vector<8x8xf32>
    %359 = arith.truncf %358 : vector<8x8xf32> to vector<8x8xbf16>
    %c15 = arith.constant 15 : index
    %c0_133 = arith.constant 0 : index
    %c0_134 = arith.constant 0 : index
    %360 = vector.load %arg4[%c15, %c0_133, %c0_134] : memref<16x8x128xbf16, #tpu.memory_space<vmem>>, vector<1x8x128xbf16>
    %361 = vector.shape_cast %360 : vector<1x8x128xbf16> to vector<8x128xbf16>
    %cst_135 = arith.constant dense<0.000000e+00> : vector<8x128xf32>
    %362 = tpu.matmul %359, %361, %cst_135 {dimension_numbers = #tpu.dot_dimension_numbers<[1], [0], [0], [1], [0, 0, 1, 1], [], []>} : vector<8x8xbf16>, vector<8x128xbf16>, vector<8x128xf32> -> vector<8x128xf32>
    %363 = arith.addf %341, %362 : vector<8x128xf32>
    %c0_136 = arith.constant 0 : index
    %c0_137 = arith.constant 0 : index
    %364 = vector.load %arg5[%c0_136, %c0_137] : memref<1x128xf32, #tpu.memory_space<vmem>>, vector<1x128xf32>
    %365 = vector.broadcast %364 : vector<1x128xf32> to vector<8x128xf32>
    %366 = arith.addf %363, %365 : vector<8x128xf32>
    %367 = arith.addf %1, %366 : vector<8x128xf32>
    %c0_138 = arith.constant 0 : index
    %c0_139 = arith.constant 0 : index
    %368 = vector.load %arg6[%c0_138, %c0_139] : memref<1x128xf32, #tpu.memory_space<vmem>>, vector<1x128xf32>
    %c0_140 = arith.constant 0 : index
    %c0_141 = arith.constant 0 : index
    %369 = vector.load %arg7[%c0_140, %c0_141] : memref<1x128xf32, #tpu.memory_space<vmem>>, vector<1x128xf32>
    %cst_142 = arith.constant dense<0.000000e+00> : vector<8xf32>
    %370 = vector.multi_reduction <add>, %367, %cst_142 [1] : vector<8x128xf32> to vector<8xf32>
    %371 = vector.shape_cast %370 : vector<8xf32> to vector<8x1xf32>
    %cst_143 = arith.constant 1.280000e+02 : f32
    %372 = vector.broadcast %cst_143 : f32 to vector<8x1xf32>
    %373 = arith.divf %371, %372 : vector<8x1xf32>
    %374 = vector.broadcast %373 : vector<8x1xf32> to vector<8x128xf32>
    %375 = arith.subf %367, %374 : vector<8x128xf32>
    %376 = arith.mulf %375, %375 : vector<8x128xf32>
    %cst_144 = arith.constant dense<0.000000e+00> : vector<8xf32>
    %377 = vector.multi_reduction <add>, %376, %cst_144 [1] : vector<8x128xf32> to vector<8xf32>
    %378 = vector.shape_cast %377 : vector<8xf32> to vector<8x1xf32>
    %cst_145 = arith.constant 1.280000e+02 : f32
    %379 = vector.broadcast %cst_145 : f32 to vector<8x1xf32>
    %380 = arith.divf %378, %379 : vector<8x1xf32>
    %cst_146 = arith.constant 9.99999996E-13 : f32
    %381 = vector.broadcast %cst_146 : f32 to vector<8x1xf32>
    %382 = arith.addf %380, %381 : vector<8x1xf32>
    %383 = math.rsqrt %382 : vector<8x1xf32>
    %384 = vector.broadcast %383 : vector<8x1xf32> to vector<8x128xf32>
    %385 = arith.mulf %375, %384 : vector<8x128xf32>
    %386 = vector.broadcast %368 : vector<1x128xf32> to vector<8x128xf32>
    %387 = arith.mulf %385, %386 : vector<8x128xf32>
    %388 = vector.broadcast %369 : vector<1x128xf32> to vector<8x128xf32>
    %389 = arith.addf %387, %388 : vector<8x128xf32>
    %390 = arith.truncf %389 : vector<8x128xf32> to vector<8x128xbf16>
    %c0_147 = arith.constant 0 : index
    %c0_148 = arith.constant 0 : index
    %391 = vector.load %arg8[%c0_147, %c0_148] : memref<128x256xbf16, #tpu.memory_space<vmem>>, vector<128x256xbf16>
    %cst_149 = arith.constant dense<0.000000e+00> : vector<8x256xf32>
    %392 = tpu.matmul %390, %391, %cst_149 {dimension_numbers = #tpu.dot_dimension_numbers<[1], [0], [0], [1], [0, 0, 1, 1], [], []>} : vector<8x128xbf16>, vector<128x256xbf16>, vector<8x256xf32> -> vector<8x256xf32>
    %c0_150 = arith.constant 0 : index
    %c0_151 = arith.constant 0 : index
    %393 = vector.load %arg9[%c0_150, %c0_151] : memref<1x256xf32, #tpu.memory_space<vmem>>, vector<1x256xf32>
    %394 = vector.broadcast %393 : vector<1x256xf32> to vector<8x256xf32>
    %395 = arith.addf %392, %394 : vector<8x256xf32>
    %cst_152 = arith.constant 5.000000e-01 : f32
    %396 = vector.broadcast %cst_152 : f32 to vector<8x256xf32>
    %397 = arith.mulf %396, %395 : vector<8x256xf32>
    %cst_153 = arith.constant 0.707106769 : f32
    %398 = vector.broadcast %cst_153 : f32 to vector<8x256xf32>
    %399 = arith.mulf %395, %398 : vector<8x256xf32>
    %400 = math.absf %399 : vector<8x256xf32>
    %cst_154 = arith.constant 0.327591091 : f32
    %401 = vector.broadcast %cst_154 : f32 to vector<8x256xf32>
    %402 = arith.mulf %401, %400 : vector<8x256xf32>
    %cst_155 = arith.constant 1.000000e+00 : f32
    %403 = vector.broadcast %cst_155 : f32 to vector<8x256xf32>
    %404 = arith.addf %403, %402 : vector<8x256xf32>
    %405 = tpu.reciprocal %404 {approx = true} : vector<8x256xf32> -> vector<8x256xf32>
    %406 = arith.mulf %404, %405 : vector<8x256xf32>
    %cst_156 = arith.constant 2.000000e+00 : f32
    %407 = vector.broadcast %cst_156 : f32 to vector<8x256xf32>
    %408 = arith.subf %407, %406 : vector<8x256xf32>
    %409 = arith.mulf %405, %408 : vector<8x256xf32>
    %cst_157 = arith.constant 1.06140542 : f32
    %410 = vector.broadcast %cst_157 : f32 to vector<8x256xf32>
    %411 = arith.mulf %410, %409 : vector<8x256xf32>
    %cst_158 = arith.constant -1.45315206 : f32
    %412 = vector.broadcast %cst_158 : f32 to vector<8x256xf32>
    %413 = arith.addf %411, %412 : vector<8x256xf32>
    %414 = arith.mulf %413, %409 : vector<8x256xf32>
    %cst_159 = arith.constant 1.42141378 : f32
    %415 = vector.broadcast %cst_159 : f32 to vector<8x256xf32>
    %416 = arith.addf %414, %415 : vector<8x256xf32>
    %417 = arith.mulf %416, %409 : vector<8x256xf32>
    %cst_160 = arith.constant -0.284496725 : f32
    %418 = vector.broadcast %cst_160 : f32 to vector<8x256xf32>
    %419 = arith.addf %417, %418 : vector<8x256xf32>
    %420 = arith.mulf %419, %409 : vector<8x256xf32>
    %cst_161 = arith.constant 0.254829586 : f32
    %421 = vector.broadcast %cst_161 : f32 to vector<8x256xf32>
    %422 = arith.addf %420, %421 : vector<8x256xf32>
    %423 = arith.mulf %422, %409 : vector<8x256xf32>
    %cst_162 = arith.constant 0.000000e+00 : f32
    %424 = vector.broadcast %cst_162 : f32 to vector<8x256xf32>
    %425 = arith.subf %424, %400 : vector<8x256xf32>
    %426 = arith.mulf %425, %400 : vector<8x256xf32>
    %427 = math.exp %426 : vector<8x256xf32>
    %428 = arith.mulf %423, %427 : vector<8x256xf32>
    %cst_163 = arith.constant 1.000000e+00 : f32
    %429 = vector.broadcast %cst_163 : f32 to vector<8x256xf32>
    %430 = arith.subf %429, %428 : vector<8x256xf32>
    %cst_164 = arith.constant 0.000000e+00 : f32
    %431 = vector.broadcast %cst_164 : f32 to vector<8x256xf32>
    %432 = arith.cmpf oge, %399, %431 : vector<8x256xf32>
    %cst_165 = arith.constant 0.000000e+00 : f32
    %433 = vector.broadcast %cst_165 : f32 to vector<8x256xf32>
    %434 = arith.subf %433, %430 : vector<8x256xf32>
    %435 = arith.select %432, %430, %434 : vector<8x256xi1>, vector<8x256xf32>
    %cst_166 = arith.constant 1.000000e+00 : f32
    %436 = vector.broadcast %cst_166 : f32 to vector<8x256xf32>
    %437 = arith.addf %436, %435 : vector<8x256xf32>
    %438 = arith.mulf %397, %437 : vector<8x256xf32>
    %439 = arith.truncf %438 : vector<8x256xf32> to vector<8x256xbf16>
    %c0_167 = arith.constant 0 : index
    %c0_168 = arith.constant 0 : index
    %440 = vector.load %arg10[%c0_167, %c0_168] : memref<256x128xbf16, #tpu.memory_space<vmem>>, vector<256x128xbf16>
    %cst_169 = arith.constant dense<0.000000e+00> : vector<8x128xf32>
    %441 = tpu.matmul %439, %440, %cst_169 {dimension_numbers = #tpu.dot_dimension_numbers<[1], [0], [0], [1], [0, 0, 1, 1], [], []>} : vector<8x256xbf16>, vector<256x128xbf16>, vector<8x128xf32> -> vector<8x128xf32>
    %c0_170 = arith.constant 0 : index
    %c0_171 = arith.constant 0 : index
    %442 = vector.load %arg11[%c0_170, %c0_171] : memref<1x128xf32, #tpu.memory_space<vmem>>, vector<1x128xf32>
    %443 = vector.broadcast %442 : vector<1x128xf32> to vector<8x128xf32>
    %444 = arith.addf %441, %443 : vector<8x128xf32>
    %445 = arith.addf %389, %444 : vector<8x128xf32>
    %c0_172 = arith.constant 0 : index
    %c0_173 = arith.constant 0 : index
    %446 = vector.load %arg12[%c0_172, %c0_173] : memref<1x128xf32, #tpu.memory_space<vmem>>, vector<1x128xf32>
    %c0_174 = arith.constant 0 : index
    %c0_175 = arith.constant 0 : index
    %447 = vector.load %arg13[%c0_174, %c0_175] : memref<1x128xf32, #tpu.memory_space<vmem>>, vector<1x128xf32>
    %cst_176 = arith.constant dense<0.000000e+00> : vector<8xf32>
    %448 = vector.multi_reduction <add>, %445, %cst_176 [1] : vector<8x128xf32> to vector<8xf32>
    %449 = vector.shape_cast %448 : vector<8xf32> to vector<8x1xf32>
    %cst_177 = arith.constant 1.280000e+02 : f32
    %450 = vector.broadcast %cst_177 : f32 to vector<8x1xf32>
    %451 = arith.divf %449, %450 : vector<8x1xf32>
    %452 = vector.broadcast %451 : vector<8x1xf32> to vector<8x128xf32>
    %453 = arith.subf %445, %452 : vector<8x128xf32>
    %454 = arith.mulf %453, %453 : vector<8x128xf32>
    %cst_178 = arith.constant dense<0.000000e+00> : vector<8xf32>
    %455 = vector.multi_reduction <add>, %454, %cst_178 [1] : vector<8x128xf32> to vector<8xf32>
    %456 = vector.shape_cast %455 : vector<8xf32> to vector<8x1xf32>
    %cst_179 = arith.constant 1.280000e+02 : f32
    %457 = vector.broadcast %cst_179 : f32 to vector<8x1xf32>
    %458 = arith.divf %456, %457 : vector<8x1xf32>
    %cst_180 = arith.constant 9.99999996E-13 : f32
    %459 = vector.broadcast %cst_180 : f32 to vector<8x1xf32>
    %460 = arith.addf %458, %459 : vector<8x1xf32>
    %461 = math.rsqrt %460 : vector<8x1xf32>
    %462 = vector.broadcast %461 : vector<8x1xf32> to vector<8x128xf32>
    %463 = arith.mulf %453, %462 : vector<8x128xf32>
    %464 = vector.broadcast %446 : vector<1x128xf32> to vector<8x128xf32>
    %465 = arith.mulf %463, %464 : vector<8x128xf32>
    %466 = vector.broadcast %447 : vector<1x128xf32> to vector<8x128xf32>
    %467 = arith.addf %465, %466 : vector<8x128xf32>
    %c0_181 = arith.constant 0 : index
    %c0_182 = arith.constant 0 : index
    %c0_183 = arith.constant 0 : index
    %468 = vector.load %arg14[%c0_181, %c0_182, %c0_183] : memref<1x8x128xf32, #tpu.memory_space<vmem>>, vector<1x8x128xf32>
    %469 = vector.shape_cast %468 : vector<1x8x128xf32> to vector<8x128xf32>
    %470 = vector.shape_cast %467 : vector<8x128xf32> to vector<1x8x128xf32>
    tpu.vector_store %arg14[%c0_181, %c0_182, %c0_183], %470 {strides = array<i32>} : memref<1x8x128xf32, #tpu.memory_space<vmem>>, vector<1x8x128xf32>,
    return
  }
  func.func @transform_0(%arg0: i32) -> (i32, i32, i32) {
    %c0_i32 = arith.constant 0 : i32
    %c0_i32_0 = arith.constant 0 : i32
    %c0_i32_1 = arith.constant 0 : i32
    return %arg0, %c0_i32, %c0_i32_0 : i32, i32, i32
  }
  func.func @transform_1(%arg0: i32) -> (i32, i32) {
    %c0_i32 = arith.constant 0 : i32
    %c0_i32_0 = arith.constant 0 : i32
    %c0_i32_1 = arith.constant 0 : i32
    return %c0_i32, %c0_i32_0 : i32, i32
  }
  func.func @transform_2(%arg0: i32) -> (i32, i32) {
    %c0_i32 = arith.constant 0 : i32
    %c0_i32_0 = arith.constant 0 : i32
    %c0_i32_1 = arith.constant 0 : i32
    return %c0_i32, %c0_i32_0 : i32, i32
  }
  func.func @transform_3(%arg0: i32) -> (i32, i32, i32) {
    %c0_i32 = arith.constant 0 : i32
    %c0_i32_0 = arith.constant 0 : i32
    %c0_i32_1 = arith.constant 0 : i32
    %c0_i32_2 = arith.constant 0 : i32
    return %c0_i32, %c0_i32_0, %c0_i32_1 : i32, i32, i32
  }
  func.func @transform_4(%arg0: i32) -> (i32, i32) {
    %c0_i32 = arith.constant 0 : i32
    %c0_i32_0 = arith.constant 0 : i32
    %c0_i32_1 = arith.constant 0 : i32
    return %c0_i32, %c0_i32_0 : i32, i32
  }
  func.func @transform_5(%arg0: i32) -> (i32, i32) {
    %c0_i32 = arith.constant 0 : i32
    %c0_i32_0 = arith.constant 0 : i32
    %c0_i32_1 = arith.constant 0 : i32
    return %c0_i32, %c0_i32_0 : i32, i32
  }
  func.func @transform_6(%arg0: i32) -> (i32, i32) {
    %c0_i32 = arith.constant 0 : i32
    %c0_i32_0 = arith.constant 0 : i32
    %c0_i32_1 = arith.constant 0 : i32
    return %c0_i32, %c0_i32_0 : i32, i32
  }
  func.func @transform_7(%arg0: i32) -> (i32, i32) {
    %c0_i32 = arith.constant 0 : i32
    %c0_i32_0 = arith.constant 0 : i32
    %c0_i32_1 = arith.constant 0 : i32
    return %c0_i32, %c0_i32_0 : i32, i32
  }
  func.func @transform_8(%arg0: i32) -> (i32, i32) {
    %c0_i32 = arith.constant 0 : i32
    %c0_i32_0 = arith.constant 0 : i32
    %c0_i32_1 = arith.constant 0 : i32
    return %c0_i32, %c0_i32_0 : i32, i32
  }
  func.func @transform_9(%arg0: i32) -> (i32, i32) {
    %c0_i32 = arith.constant 0 : i32
    %c0_i32_0 = arith.constant 0 : i32
    %c0_i32_1 = arith.constant 0 : i32
    return %c0_i32, %c0_i32_0 : i32, i32
  }
  func.func @transform_10(%arg0: i32) -> (i32, i32) {
    %c0_i32 = arith.constant 0 : i32
    %c0_i32_0 = arith.constant 0 : i32
    %c0_i32_1 = arith.constant 0 : i32
    return %c0_i32, %c0_i32_0 : i32, i32
  }
  func.func @transform_11(%arg0: i32) -> (i32, i32) {
    %c0_i32 = arith.constant 0 : i32
    %c0_i32_0 = arith.constant 0 : i32
    %c0_i32_1 = arith.constant 0 : i32
    return %c0_i32, %c0_i32_0 : i32, i32
  }
  func.func @transform_12(%arg0: i32) -> (i32, i32) {
    %c0_i32 = arith.constant 0 : i32
    %c0_i32_0 = arith.constant 0 : i32
    %c0_i32_1 = arith.constant 0 : i32
    return %c0_i32, %c0_i32_0 : i32, i32
  }
  func.func @transform_13(%arg0: i32) -> (i32, i32, i32) {
    %c0_i32 = arith.constant 0 : i32
    %c0_i32_0 = arith.constant 0 : i32
    %c0_i32_1 = arith.constant 0 : i32
    return %arg0, %c0_i32, %c0_i32_0 : i32, i32, i32
  }
}

</mosaic_0001>

<bundles_post_ra>
// kernel: encoder_forward.1
= control target key start
LH: loop header
LB: loop body
LE: loop exit
PB: predicated region body
PF: predicated region fallthrough
CT: control target
= control target key end

     0   :  { %18 = vsyncpa [#allocation3], 0  ;;  %s6311_s0 = inlined_call_operand.vmem [shape: f32[2,8,128], index: 0, kind: input, shape index: {}]   ;;  %s6312_s1 = inlined_call_operand.vmem [shape: bf16[128,384], index: 1, kind: input, shape index: {}]   ;;  %s6313_s2 = inlined_call_operand.vmem [shape: f32[1,384], index: 2, kind: input, shape index: {}]   ;;  %s6314_s3 = inlined_call_operand.vmem [shape: bf16[16,8,128], index: 3, kind: input, shape index: {}]   ;;  %s6315_s4 = inlined_call_operand.vmem [shape: f32[1,128], index: 4, kind: input, shape index: {}]   ;;  %s6316_s5 = inlined_call_operand.vmem [shape: f32[1,128], index: 5, kind: input, shape index: {}]   ;;  %s6317_s6 = inlined_call_operand.vmem [shape: f32[1,128], index: 6, kind: input, shape index: {}]   ;;  %s6318_s7 = inlined_call_operand.vmem [shape: bf16[128,256], index: 7, kind: input, shape index: {}]   ;;  %s6319_s8 = inlined_call_operand.vmem [shape: f32[1,256], index: 8, kind: input, shape index: {}]   ;;  %s6320_s9 = inlined_call_operand.vmem [shape: bf16[256,128], index: 9, kind: input, shape index: {}]   ;;  %s6321_s10 = inlined_call_operand.vmem [shape: f32[1,128], index: 10, kind: input, shape index: {}]   ;;  %s6322_s11 = inlined_call_operand.vmem [shape: f32[1,128], index: 11, kind: input, shape index: {}]   ;;  %s6323_s12 = inlined_call_operand.vmem [shape: f32[1,128], index: 12, kind: input, shape index: {}]   ;;  %s6324_s13 = inlined_call_operand.hbm [shape: f32[2,8,128], index: 13, kind: output, shape index: {}]  }
   0x1   :  { %20 = vsyncpa [#allocation3 + $0x1], 0  ;;  %s5585_s25 = smov 0   ;;  %s5587_s26 = smov 0  }
   0x2   :  { %s5589_s27 = smov 0   ;;  %s5591_s28 = smov 0  }
   0x3 LB: > { %6329 = sst [smem:[#allocation5_spill]] %s5490_s27  ;;  %s5606_s29 = sadd.s32 4294967295, %s5494_s28   ;;  %s5494_s28 = sphi %s5591_s28, %s6336_s28   ;;  %s5490_s27 = sphi %s5589_s27, %s6338_s27   ;;  %s5486_s26 = sphi %s5587_s26, %s6340_s26   ;;  %s5482_s25 = sphi %s5585_s25, %s6339_s25  }
   0x4   : > { %s4672_s30 = sadd.s32 4294967294, %s5494_s28   ;;  %s5610_s14 = sadd.s32 1, %s5494_s28  }
   0x5   : > { %6330 = sst [smem:[#allocation6_spill]] %s5610_s14  ;;  %s311_s15 = sadd.s32 1, %s5490_s27 }
   0x6   : > { %s308_s16 = ssub.s32 %s5494_s28, %s5610_s14  ;;  %p321_p0 = scmp.ne.s32.totalorder %s5490_s27, %s5486_s26 }
   0x7   : > { %p309_p1 = scmp.eq.s32.totalorder %s308_s16, 0  ;;  %p322_p2 = scmp.eq.s32.totalorder %s5606_s29, 1 }
   0x8   : > { %p327_p3 = scmp.ne.s32.totalorder %s5486_s26, %s5482_s25  ;;  %p328_p4 = scmp.eq.s32.totalorder %s4672_s30, 1 }
   0x9   : > { %s5621_s17 = scalar_select %p309_p1, %s5490_s27, %s311_s15  }
   0xa   : > { %p5623_p5 = por %p322_p2, %p321_p0  ;;  %p5627_p6 = por %p328_p4, %p327_p3 }
   0xb   : > { %6331 = sst [smem:[#allocation7_spill]] %s5621_s17  ;;  %p4675_p7 = scmp.ge.s32.totalorder %s5494_s28, 1 }
   0xc   : > { %s6333_s19 = scalar_select %p5627_p6, 1, 0 }
   0xd   : > { %p389_p8 = scmp.lt.s32.totalorder %s5494_s28, 3 }
   0xe   : > { %6334 = sst [smem:[#allocation8_spill]] %s6333_s19 }
   0xf   : > { %p390_p9 = pnand %p4675_p7, %p389_p8 }
  0x10   : > { %v5283_v0 = vld [vmem:[%s6312_s1 + $0x4] ss:$12 sps:$4 sm:$0xff] (!%p390_p9)   ;;  %v5285_v1 = vld [vmem:[%s6312_s1] ss:$12 sps:$4 sm:$0xff] (!%p390_p9)   ;;  %v5496_v2 = vmov (!%p390_p9), 0   ;;  %p432_p10 = scmp.lt.s32.totalorder (!%p390_p9), %s5606_s29, 1  ;;  %v473_v20 = vlaneseq (!%p390_p9) }
  0x11   : > { %393 = sbr.rel (%p390_p9) target bundleno = 10138 (0x279a), region = 72  ;;  %648 = vmatprep.mubr.bf16.mxu0 (!%p390_p9), %v5496_v2  ;;  %616 = vmatprep.subr.bf16.mxu0 (!%p390_p9), %v5283_v0  ;;  %v5286_v3 = vld [vmem:[%s6312_s1 + $0x1c] ss:$12 sps:$4 sm:$0xff] (!%p390_p9)   ;;  %v5288_v4 = vld [vmem:[%s6312_s1 + $0x18] ss:$12 sps:$4 sm:$0xff] (!%p390_p9)   ;;  %v5497_v19 = vmov (!%p390_p9), 0.0  }
  0x12   : > { %617 = vmatpush1.bf16.msra.mxu0 (!%p390_p9), %v5285_v1  ;;  %v5289_v5 = vld [vmem:[%s6312_s1 + $0x34] ss:$12 sps:$4 sm:$0xff] (!%p390_p9)   ;;  %v5291_v6 = vld [vmem:[%s6312_s1 + $0x30] ss:$12 sps:$4 sm:$0xff] (!%p390_p9)   ;;  %v5292_v7 = vld [vmem:[%s6312_s1 + $0x4c] ss:$12 sps:$4 sm:$0xff] (!%p390_p9)   ;;  %4950 = vmatprep.subr.bf16.mxu1 (!%p390_p9), %v5497_v19 }
  0x13   : > { %618 = vmatprep.subr.bf16.mxu0 (!%p390_p9), %v5286_v3  ;;  %v5294_v8 = vld [vmem:[%s6312_s1 + $0x48] ss:$12 sps:$4 sm:$0xff] (!%p390_p9)   ;;  %v5295_v9 = vld [vmem:[%s6312_s1 + $0x64] ss:$12 sps:$4 sm:$0xff] (!%p390_p9)   ;;  %v5297_v10 = vld [vmem:[%s6312_s1 + $0x60] ss:$12 sps:$4 sm:$0xff] (!%p390_p9)  }
  0x14   : > { %v5298_v11 = vld [vmem:[%s6312_s1 + $0x7c] ss:$12 sps:$4 sm:$0xff] (!%p390_p9)   ;;  %v5300_v12 = vld [vmem:[%s6312_s1 + $0x78] ss:$12 sps:$4 sm:$0xff] (!%p390_p9)   ;;  %v5301_v13 = vld [vmem:[%s6312_s1 + $0x94] ss:$12 sps:$4 sm:$0xff] (!%p390_p9)  }
  0x15   : > { %v5303_v14 = vld [vmem:[%s6312_s1 + $0x90] ss:$12 sps:$4 sm:$0xff] (!%p390_p9)   ;;  %v5304_v15 = vld [vmem:[%s6312_s1 + $0xac] ss:$12 sps:$4 sm:$0xff] (!%p390_p9)   ;;  %v5306_v16 = vld [vmem:[%s6312_s1 + $0xa8] ss:$12 sps:$4 sm:$0xff] (!%p390_p9)  }
  0x16   : > { %619 = vmatpush1.bf16.msra.mxu0 (!%p390_p9), %v5288_v4  ;;  %vm5498_vm0 = vmmov (!%p390_p9), 0   ;;  %v5696_v21 = vshrl.u32 (!%p390_p9), %v473_v20, 7  ;;  %v471_v23 = vld [vmem:[%s6313_s2] sm:$0x7] (!%p390_p9)  ;;  %v5307_v24 = vld [vmem:[%s6312_s1 + $0x8] ss:$12 sps:$4 sm:$0xff] (!%p390_p9)  }
  0x17   : > { %620 = vmatprep.subr.bf16.mxu0 (!%p390_p9), %v5289_v5  ;;  %4966 = vmatprep.mubr.msk.bf16.mxu1 (!%p390_p9), %vm5498_vm0, %v5497_v19  ;;  %v5308_v26 = vld [vmem:[%s6312_s1 + $0x20] ss:$12 sps:$4 sm:$0xff] (!%p390_p9)   ;;  %vm697_vm1 = vcmask (!%p390_p9), 64512   ;;  %v5309_v31 = vld [vmem:[%s6312_s1 + $0x38] ss:$12 sps:$4 sm:$0xff] (!%p390_p9)   ;;  %s5499_s23 = smov (!%p390_p9), 120  }
  0x18   : > { %s433_s15 = scalar_select %p432_p10, %s5606_s29, 1  ;;  %v479_v22 = vsub.s32 1, %v5696_v21  ;;  %v475_v25 = vsub.s32 0, %v5696_v21  ;;  %4951 = vmatpush3.bf16.msra.mxu1 %v5307_v24  ;;  %v5310_v36 = vld [vmem:[%s6312_s1 + $0x50] ss:$12 sps:$4 sm:$0xff]   ;;  %v483_v47 = vsub.s32 2, %v5696_v21 }
  0x19   : > { %4952 = vmatprep.subr.bf16.mxu1 %v5497_v19  ;;  %v5311_v37 = vld [vmem:[%s6312_s1 + $0x68] ss:$12 sps:$4 sm:$0xff]   ;;  %v5312_v38 = vld [vmem:[%s6312_s1 + $0x80] ss:$12 sps:$4 sm:$0xff]   ;;  %v5313_v39 = vld [vmem:[%s6312_s1 + $0x98] ss:$12 sps:$4 sm:$0xff]  }
  0x1a   : > { %621 = vmatpush1.bf16.msra.mxu0 %v5291_v6  ;;  %s4677_s16 = sshll.u32 %s433_s15, 3  ;;  %v480_v27 = vrot.slane %v471_v23, %v479_v22  ;;  %v476_v29 = vrot.slane %v471_v23, %v475_v25  ;;  %v5314_v40 = vld [vmem:[%s6312_s1 + $0xb0] ss:$12 sps:$4 sm:$0xff]   ;;  %v484_v50 = vrot.slane %v471_v23, %v483_v47  ;;  %s5500_s27 = smov 112   ;;  %vm1034_vm2 = vcmask 1043456  }
  0x1b   : > { %622 = vmatprep.subr.bf16.mxu0 %v5292_v7  ;;  %s5684_s17 = scalar_lea.vmem %s6311_s0, %s4677_s16  ;;  %s5501_s24 = smov 104  }
  0x1c   : > { %v437_v17 = vld [vmem:[%s5684_s17] sm:$0xff]  ;;  %4953 = vmatpush3.bf16.msra.mxu1 %v5308_v26  ;;  %s5502_s16 = smov 96   ;;  %s5503_s21 = smov 88  }
  0x1d   : > { %v438_v18 = vpack.c.bf16 %v437_v17, %v437_v17  ;;  %4954 = vmatprep.subr.bf16.mxu1 %v5497_v19  ;;  %s5506_s20 = smov 64   ;;  %s5507_s22 = smov 56  }
  0x1e   : > { %623 = vmatpush1.bf16.msra.mxu0 %v5294_v8  ;;  %v4708_v8 = vld [vmem:[%s6314_s3 + $0x4] sm:$0xf]  ;;  %s5508_s19 = smov 48   ;;  %s5509_s30 = smov 40  }
  0x1f   : > { %624 = vmatprep.subr.bf16.mxu0 %v5295_v9  ;;  %v1036_v9 = vsel %vm1034_vm2, %v4708_v8, 0  ;;  %s5510_s14 = smov 32   ;;  %s5512_s15 = smov 16  }
  0x20   : > { %4955 = vmatpush3.bf16.msra.mxu1 %v5309_v31 }
  0x21   : > { %4956 = vmatprep.subr.bf16.mxu1 %v5497_v19 }
  0x22   : > { %625 = vmatpush1.bf16.msra.mxu0 %v5297_v10 }
  0x23   : > { %626 = vmatprep.subr.bf16.mxu0 %v5298_v11 }
  0x24   : > { %4957 = vmatpush3.bf16.msra.mxu1 %v5310_v36 }
  0x25   : > { %4958 = vmatprep.subr.bf16.mxu1 %v5497_v19 }
  0x26   : > { %627 = vmatpush1.bf16.msra.mxu0 %v5300_v12  ;;  %v860_v12 = vld [vmem:[%s6314_s3] sm:$0xf] }
  0x27   : > { %628 = vmatprep.subr.bf16.mxu0 %v5301_v13 }
  0x28   : > { %4959 = vmatpush3.bf16.msra.mxu1 %v5311_v37 }
  0x29   : > { %4960 = vmatprep.subr.bf16.mxu1 %v5497_v19 }
  0x2a   : > { %629 = vmatpush1.bf16.msra.mxu0 %v5303_v14 }
  0x2b   : > { %630 = vmatprep.subr.bf16.mxu0 %v5304_v15  ;;  %v1082_v15 = vsel %vm1034_vm2, %v860_v12, 0 }
  0x2c   : > { %4961 = vmatpush3.bf16.msra.mxu1 %v5312_v38 }
  0x2d   : > { %4962 = vmatprep.subr.bf16.mxu1 %v5497_v19 }
  0x2e   : > { %631 = vmatpush1.bf16.msra.mxu0 %v5306_v16 }
  0x2f   : > { %4970 = vmatprep.subr.mxu0 %v5497_v19 }
  0x30   : > { %4963 = vmatpush3.bf16.msra.mxu1 %v5313_v39 }
  0x31   : > { %649 = vmatmul.mubr.bf16.vlgmr.msra.gmra.mrb[0].mxu0 %v438_v18  ;;  %4964 = vmatprep.subr.bf16.mxu1 %v5497_v19 }
  0x32   : > { %4972 = vmatprep.mubr.msk.f32.mxu0 %vm5498_vm0, %v5497_v19 }
  0x34   : > { %4965 = vmatpush3.bf16.msra.mxu1 %v5314_v40 }
  0x35   : > { %4975 = vmatprep.subr.mxu1 %v5497_v19 }
  0x37   : > { %4967 = vmatmul.mubr.bf16.vlgmr.msra.gmra.mrb[0].mxu1 %v438_v18 }
  0x38   : > { %4977 = vmatprep.mubr.msk.f32.mxu1 %vm5498_vm0, %v5497_v19 }
 0x104   : > { %v650_v28 = vpop.f32.mrb[0].mxu0 }
 0x105   : > { %v652_v30 = vpop.f32.mrb[1].mxu0  ;;  %v5724_v35 = vadd.f32 %v650_v28, %v476_v29 }
 0x106   : > { %v5717_v32 = vadd.f32 %v652_v30, %v480_v27  ;;  %v654_v33 = vpop.f32.mrb[2].mxu0 }
 0x107   : > { %v655_v34 = vpop.f32.mrb[3].mxu0 }
 0x108   : > { %863 = vrot.lane.b32.xlu0 %v5717_v32, %s5499_s23  ;;  %4971 = vmatpush3.xpose.msk.msra.mxu0 %vm697_vm1, %v5717_v32 }
 0x109   : > { %4980 = vmatprep.subr.mxu0 %v5497_v19 }
 0x10a   : > { %v691_v48 = vpop.f32.mrb[0].mxu1 }
 0x10b   : > { %4973 = vmatmul.mubr.msk.f32.vlgmr.msra.gmra.mrb[4].mxu0 %vm697_vm1, %v5724_v35  ;;  %v4968_v49 = vpop.f32.mrb[1].mxu1  ;;  %v5763_v53 = vadd.f32 %v691_v48, %v484_v50 }
 0x10c   : > { %861 = vrot.lane.b32.xlu0 %v5724_v35, %s5499_s23  ;;  %4982 = vmatprep.mubr.msk.f32.mxu0 %vm5498_vm0, %v5497_v19  ;;  %v694_v51 = vpop.f32.mrb[2].mxu1 }
 0x10d   : > { %v4969_v52 = vpop.f32.mrb[3].mxu1  ;;  %4976 = vmatpush3.msra.mxu1 %v5763_v53 }
 0x10e   : > { %4985 = vmatprep.subr.mxu1 %v5497_v19 }
 0x17a   : > { %v864_v41 = vpop.permute.xlu0 %863 }
 0x17b   : > { %4981 = vmatpush3.xpose.msk.msra.mxu0 %vm697_vm1, %v864_v41 }
 0x17c   : > { %4990 = vmatprep.subr.bf16.mxu0 %v5497_v19 }
 0x17e   : > { %v862_v42 = vpop.permute.xlu0 %861 }
 0x17f   : > { %4983 = vmatmul.mubr.msk.f32.vlgmr.msra.gmra.mrb[6].mxu0 %vm697_vm1, %v862_v42 }
 0x180   : > { %4992 = vmatprep.mubr.msk.bf16.mxu0 %vm5498_vm0, %v5497_v19  ;;  %4991 = vmatpush3.bf16.msra.mxu0 %v1036_v9 }
 0x181   : > { %5002 = vmatprep.subr.mxu0 %v5497_v19 }
 0x1de   : > { %v770_v43 = vpop.f32.mrb[4].mxu0 }
 0x1df   : > { %v774_v44 = vmul.f32 0.35355338, %v770_v43  ;;  %v4974_v45 = vpop.f32.mrb[5].mxu0 }
 0x1e1   : > { %v775_v46 = vsel %vm697_vm1, %v774_v44, -inf }
 0x1e2   : > { %776 = vmax.xlane.f32.xlu1 %v775_v46 }
 0x252   : > { %v935_v54 = vpop.f32.mrb[6].mxu0 }
 0x253   : > { %v939_v55 = vmul.f32 0.35355338, %v935_v54  ;;  %v4984_v56 = vpop.f32.mrb[7].mxu0 }
 0x254   : > { %v4714_v56 = vld [vmem:[%s6314_s3 + $0x8] sm:$0xf] }
 0x255   : > { %v940_v57 = vsel %vm697_vm1, %v939_v55, -inf }
 0x256   : > { %941 = vmax.xlane.f32.xlu1 %v940_v57  ;;  %v1297_v57 = vsel %vm1034_vm2, %v4714_v56, 0 }
 0x26f   : > { %v777_v58 = vpop.xlane.xlu1 %776 }
 0x270   : > { %v778_v59 = vsub.f32 %v774_v44, %v777_v58 }
 0x272   : > { %v779_v60 = vmul.f32 1.442695, %v778_v59 }
 0x274   : > { %5355 = vpow2.f32 %v779_v60 }
 0x27e   : > { %v5356_v61 = vpop.eup %5355 }
 0x27f   : > { %v781_v62 = vsel %vm697_vm1, %v5356_v61, 0.0 }
 0x280   : > { %782 = vadd.xlane.f32.xlu0 %v781_v62 }
 0x296   : > { %1214 = vrot.lane.b32.xlu0 %v5763_v53, %s5500_s27 }
 0x29a   : > { %1342 = vrot.lane.b32.xlu0 %v5717_v32, %s5501_s24 }
 0x2e3   : > { %v942_v63 = vpop.xlane.xlu1 %941 }
 0x2e4   : > { %v943_v0 = vsub.f32 %v939_v55, %v942_v63 }
 0x2e6   : > { %v944_v1 = vmul.f32 1.442695, %v943_v0 }
 0x2e8   : > { %5357 = vpow2.f32 %v944_v1 }
 0x2f2   : > { %v5358_v3 = vpop.eup %5357 }
 0x2f3   : > { %v946_v4 = vsel %vm697_vm1, %v5358_v3, 0.0 }
 0x2f4   : > { %947 = vadd.xlane.f32.xlu1 %v946_v4 }
 0x305   : > { %952 = vrot.lane.b32.xlu1 %v5763_v53, %s5499_s23  ;;  %s5505_s23 = smov 72  }
 0x309   : > { %1126 = vrot.lane.b32.xlu1 %v5717_v32, %s5500_s27 }
 0x30d   : > { %v783_v5 = vpop.xlane.xlu0 %782  ;;  %1124 = vrot.lane.b32.xlu1 %v5724_v35, %s5500_s27  ;;  %s5511_s27 = smov 24  }
 0x30e   : > { %5359 = vrcp.f32 %v783_v5 }
 0x311   : > { %v1215_v20 = vpop.permute.xlu0 %1214 }
 0x315   : > { %v1343_v49 = vpop.permute.xlu0 %1342 }
 0x318   : > { %v5360_v6 = vpop.eup %5359 }
 0x319   : > { %v785_v7 = vmul.f32 %v5360_v6, %v5356_v61 }
 0x31b   : > { %4978 = vmatmul.mubr.msk.f32.vlgmr.msra.gmra.mrb[4].mxu1 %vm697_vm1, %v785_v7 }
 0x31c   : > { %4987 = vmatprep.mubr.msk.f32.mxu1 %vm5498_vm0, %v5497_v19 }
 0x381   : > { %v948_v10 = vpop.xlane.xlu1 %947 }
 0x382   : > { %5361 = vrcp.f32 %v948_v10 }
 0x385   : > { %v953_v11 = vpop.permute.xlu1 %952 }
 0x386   : > { %4986 = vmatpush3.msra.mxu1 %v953_v11 }
 0x387   : > { %4996 = vmatprep.subr.bf16.mxu1 %v5497_v19 }
 0x389   : > { %v1127_v27 = vpop.permute.xlu1 %1126 }
 0x38c   : > { %v5362_v13 = vpop.eup %5361 }
 0x38d   : > { %v950_v14 = vmul.f32 %v5362_v13, %v5358_v3  ;;  %v1125_v28 = vpop.permute.xlu1 %1124 }
 0x38f   : > { %4988 = vmatmul.mubr.msk.f32.vlgmr.msra.gmra.mrb[6].mxu1 %vm697_vm1, %v950_v14 }
 0x390   : > { %4997 = vmatpush3.bf16.msra.mxu1 %v1082_v15  ;;  %4998 = vmatprep.mubr.msk.bf16.mxu1 %vm5498_vm0, %v5497_v19 }
 0x391   : > { %5007 = vmatprep.subr.mxu1 %v5497_v19 }
 0x3ee   : > { %v855_v16 = vpop.f32.mrb[4].mxu1 }
 0x3ef   : > { %v859_v17 = vpack.c.bf16 %v855_v16, %v855_v16  ;;  %v4979_v18 = vpop.f32.mrb[5].mxu1 }
 0x3f0   : > { %v4719_v18 = vld [vmem:[%s6314_s3 + $0xc] sm:$0xf] }
 0x3f1   : > { %4999 = vmatmul.mubr.msk.bf16.vlgmr.msra.gmra.mrb[8].mxu1 %vm697_vm1, %v859_v17 }
 0x3f2   : > { %5008 = vmatpush3.msra.mxu1 %v1215_v20  ;;  %5009 = vmatprep.mubr.msk.f32.mxu1 %vm5498_vm0, %v5497_v19  ;;  %v1513_v20 = vsel %vm1034_vm2, %v4719_v18, 0 }
 0x3f3   : > { %5018 = vmatprep.subr.mxu1 %v5497_v19 }
 0x462   : > { %v1024_v23 = vpop.f32.mrb[6].mxu1 }
 0x463   : > { %v1028_v24 = vpack.c.bf16 %v1024_v23, %v1024_v23  ;;  %v4989_v26 = vpop.f32.mrb[7].mxu1 }
 0x465   : > { %4993 = vmatmul.mubr.msk.bf16.vlgmr.msra.gmra.mrb[8].mxu0 %vm697_vm1, %v1028_v24 }
 0x466   : > { %5003 = vmatpush3.xpose.msk.msra.mxu0 %vm697_vm1, %v1127_v27  ;;  %5004 = vmatprep.mubr.msk.f32.mxu0 %vm5498_vm0, %v5497_v19 }
 0x467   : > { %5012 = vmatprep.subr.bf16.mxu0 %v5497_v19 }
 0x46d   : > { %5005 = vmatmul.mubr.msk.f32.vlgmr.msra.gmra.mrb[12].mxu0 %vm697_vm1, %v1125_v28 }
 0x46e   : > { %5014 = vmatprep.mubr.msk.bf16.mxu0 %vm5498_vm0, %v5497_v19  ;;  %5013 = vmatpush3.bf16.msra.mxu0 %v1297_v57 }
 0x46f   : > { %5028 = vmatprep.subr.bf16.mxu0 %v5497_v19 }
 0x4c4   : > { %v1118_v29 = vpop.f32.mrb[8].mxu1 }
 0x4c5   : > { %v5000_v30 = vpop.f32.mrb[9].mxu1 }
 0x4c6   : > { %v1121_v31 = vpop.f32.mrb[10].mxu1 }
 0x4c7   : > { %v5001_v33 = vpop.f32.mrb[11].mxu1 }
 0x538   : > { %v1072_v34 = vpop.f32.mrb[8].mxu0 }
 0x539   : > { %v1119_v36 = vadd.f32 %v1118_v29, %v1072_v34  ;;  %v4994_v37 = vpop.f32.mrb[9].mxu0 }
 0x53a   : > { %v1075_v38 = vpop.f32.mrb[10].mxu0 }
 0x53b   : > { %v4995_v39 = vpop.f32.mrb[11].mxu0 }
 0x540   : > { %v1198_v40 = vpop.f32.mrb[12].mxu0 }
 0x541   : > { %v1202_v41 = vmul.f32 0.35355338, %v1198_v40  ;;  %v5006_v42 = vpop.f32.mrb[13].mxu0 }
 0x543   : > { %v1203_v43 = vsel %vm697_vm1, %v1202_v41, -inf }
 0x544   : > { %1204 = vmax.xlane.f32.xlu1 %v1203_v43 }
 0x555   : > { %1430 = vrot.lane.b32.xlu1 %v5763_v53, %s5501_s24 }
 0x559   : > { %1558 = vrot.lane.b32.xlu1 %v5717_v32, %s5502_s16 }
 0x5d1   : > { %v1205_v44 = vpop.xlane.xlu1 %1204 }
 0x5d2   : > { %v1206_v45 = vsub.f32 %v1202_v41, %v1205_v44 }
 0x5d4   : > { %v1207_v46 = vmul.f32 1.442695, %v1206_v45 }
 0x5d5   : > { %v1431_v55 = vpop.permute.xlu1 %1430 }
 0x5d6   : > { %5363 = vpow2.f32 %v1207_v46 }
 0x5d9   : > { %v1559_v12 = vpop.permute.xlu1 %1558 }
 0x5e0   : > { %v5364_v47 = vpop.eup %5363 }
 0x5e1   : > { %v1209_v48 = vsel %vm697_vm1, %v5364_v47, 0.0 }
 0x5e2   : > { %1210 = vadd.xlane.f32.xlu0 %v1209_v48 }
 0x5f8   : > { %1340 = vrot.lane.b32.xlu0 %v5724_v35, %s5501_s24  ;;  %s5504_s24 = smov 80  }
 0x66f   : > { %v1211_v50 = vpop.xlane.xlu0 %1210 }
 0x670   : > { %5365 = vrcp.f32 %v1211_v50 }
 0x673   : > { %v1341_v54 = vpop.permute.xlu0 %1340 }
 0x67a   : > { %v5366_v51 = vpop.eup %5365 }
 0x67b   : > { %v1213_v52 = vmul.f32 %v5366_v51, %v5364_v47 }
 0x67d   : > { %5010 = vmatmul.mubr.msk.f32.vlgmr.msra.gmra.mrb[12].mxu1 %vm697_vm1, %v1213_v52 }
 0x67e   : > { %5019 = vmatpush3.xpose.msk.msra.mxu1 %vm697_vm1, %v1343_v49  ;;  %5020 = vmatprep.mubr.msk.f32.mxu1 %vm5498_vm0, %v5497_v19  ;;  %v4724_v49 = vld [vmem:[%s6314_s3 + $0x10] sm:$0xf] }
 0x67f   : > { %5023 = vmatprep.subr.mxu1 %v5497_v19  ;;  %v1729_v50 = vsel %vm1034_vm2, %v4724_v49, 0 }
 0x681   : > { %5021 = vmatmul.mubr.msk.f32.vlgmr.msra.gmra.mrb[14].mxu1 %vm697_vm1, %v1341_v54 }
 0x682   : > { %5024 = vmatpush3.msra.mxu1 %v1431_v55  ;;  %5025 = vmatprep.mubr.msk.f32.mxu1 %vm5498_vm0, %v5497_v19 }
 0x683   : > { %5034 = vmatprep.subr.mxu1 %v5497_v19 }
 0x750   : > { %v1286_v58 = vpop.f32.mrb[12].mxu1 }
 0x751   : > { %v1290_v59 = vpack.c.bf16 %v1286_v58, %v1286_v58  ;;  %v5011_v60 = vpop.f32.mrb[13].mxu1 }
 0x753   : > { %5015 = vmatmul.mubr.msk.bf16.vlgmr.msra.gmra.mrb[16].mxu0 %vm697_vm1, %v1290_v59 }
 0x754   : > { %v1414_v61 = vpop.f32.mrb[14].mxu1  ;;  %5030 = vmatprep.mubr.msk.bf16.mxu0 %vm5498_vm0, %v5497_v19  ;;  %5029 = vmatpush3.bf16.msra.mxu0 %v1513_v20 }
 0x755   : > { %v1418_v62 = vmul.f32 0.35355338, %v1414_v61  ;;  %v5022_v63 = vpop.f32.mrb[15].mxu1  ;;  %5044 = vmatprep.subr.bf16.mxu0 %v5497_v19 }
 0x757   : > { %v1419_v0 = vsel %vm697_vm1, %v1418_v62, -inf }
 0x758   : > { %1420 = vmax.xlane.f32.xlu0 %v1419_v0 }
 0x76e   : > { %1646 = vrot.lane.b32.xlu0 %v5763_v53, %s5502_s16 }
 0x772   : > { %1774 = vrot.lane.b32.xlu0 %v5717_v32, %s5503_s21 }
 0x7e5   : > { %v1421_v1 = vpop.xlane.xlu0 %1420 }
 0x7e6   : > { %v1422_v3 = vsub.f32 %v1418_v62, %v1421_v1 }
 0x7e8   : > { %v1423_v4 = vmul.f32 1.442695, %v1422_v3 }
 0x7e9   : > { %v1647_v17 = vpop.permute.xlu0 %1646 }
 0x7ea   : > { %5367 = vpow2.f32 %v1423_v4 }
 0x7ed   : > { %v1775_v43 = vpop.permute.xlu0 %1774 }
 0x7f4   : > { %v5368_v5 = vpop.eup %5367 }
 0x7f5   : > { %v1425_v6 = vsel %vm697_vm1, %v5368_v5, 0.0 }
 0x7f6   : > { %1426 = vadd.xlane.f32.xlu1 %v1425_v6 }
 0x807   : > { %1556 = vrot.lane.b32.xlu1 %v5724_v35, %s5502_s16  ;;  %s5513_s16 = smov 8  }
 0x826   : > { %v1333_v7 = vpop.f32.mrb[16].mxu0 }
 0x827   : > { %v1339_v8 = vadd.f32 %v1333_v7, %v1119_v36  ;;  %v5016_v9 = vpop.f32.mrb[17].mxu0 }
 0x828   : > { %v1336_v10 = vpop.f32.mrb[18].mxu0 }
 0x829   : > { %v5017_v11 = vpop.f32.mrb[19].mxu0 }
 0x883   : > { %v1427_v13 = vpop.xlane.xlu1 %1426 }
 0x884   : > { %5369 = vrcp.f32 %v1427_v13 }
 0x887   : > { %v1557_v16 = vpop.permute.xlu1 %1556 }
 0x88e   : > { %v5370_v14 = vpop.eup %5369 }
 0x88f   : > { %v1429_v15 = vmul.f32 %v5370_v14, %v5368_v5 }
 0x891   : > { %5026 = vmatmul.mubr.msk.f32.vlgmr.msra.gmra.mrb[16].mxu1 %vm697_vm1, %v1429_v15 }
 0x892   : > { %5035 = vmatpush3.xpose.msk.msra.mxu1 %vm697_vm1, %v1559_v12  ;;  %5036 = vmatprep.mubr.msk.f32.mxu1 %vm5498_vm0, %v5497_v19  ;;  %v4729_v12 = vld [vmem:[%s6314_s3 + $0x14] sm:$0xf] }
 0x893   : > { %5039 = vmatprep.subr.mxu1 %v5497_v19  ;;  %v1945_v13 = vsel %vm1034_vm2, %v4729_v12, 0 }
 0x895   : > { %5037 = vmatmul.mubr.msk.f32.vlgmr.msra.gmra.mrb[18].mxu1 %vm697_vm1, %v1557_v16 }
 0x896   : > { %5040 = vmatpush3.msra.mxu1 %v1647_v17  ;;  %5041 = vmatprep.mubr.msk.f32.mxu1 %vm5498_vm0, %v5497_v19 }
 0x897   : > { %5050 = vmatprep.subr.mxu1 %v5497_v19 }
 0x964   : > { %v1502_v23 = vpop.f32.mrb[16].mxu1 }
 0x965   : > { %v1506_v24 = vpack.c.bf16 %v1502_v23, %v1502_v23  ;;  %v5027_v26 = vpop.f32.mrb[17].mxu1 }
 0x967   : > { %5031 = vmatmul.mubr.msk.bf16.vlgmr.msra.gmra.mrb[20].mxu0 %vm697_vm1, %v1506_v24 }
 0x968   : > { %v1630_v27 = vpop.f32.mrb[18].mxu1  ;;  %5046 = vmatprep.mubr.msk.bf16.mxu0 %vm5498_vm0, %v5497_v19  ;;  %5045 = vmatpush3.bf16.msra.mxu0 %v1729_v50 }
 0x969   : > { %v1634_v28 = vmul.f32 0.35355338, %v1630_v27  ;;  %v5038_v29 = vpop.f32.mrb[19].mxu1  ;;  %5060 = vmatprep.subr.bf16.mxu0 %v5497_v19 }
 0x96b   : > { %v1635_v30 = vsel %vm697_vm1, %v1634_v28, -inf }
 0x96c   : > { %1636 = vmax.xlane.f32.xlu1 %v1635_v30 }
 0x97d   : > { %1862 = vrot.lane.b32.xlu1 %v5763_v53, %s5503_s21 }
 0x981   : > { %1990 = vrot.lane.b32.xlu1 %v5717_v32, %s5504_s24 }
 0x9f9   : > { %v1637_v31 = vpop.xlane.xlu1 %1636 }
 0x9fa   : > { %v1638_v33 = vsub.f32 %v1634_v28, %v1637_v31 }
 0x9fc   : > { %v1639_v34 = vmul.f32 1.442695, %v1638_v33 }
 0x9fd   : > { %v1863_v48 = vpop.permute.xlu1 %1862 }
 0x9fe   : > { %5371 = vpow2.f32 %v1639_v34 }
 0xa01   : > { %v1991_v6 = vpop.permute.xlu1 %1990 }
 0xa08   : > { %v5372_v36 = vpop.eup %5371 }
 0xa09   : > { %v1641_v37 = vsel %vm697_vm1, %v5372_v36, 0.0 }
 0xa0a   : > { %1642 = vadd.xlane.f32.xlu0 %v1641_v37 }
 0xa20   : > { %1772 = vrot.lane.b32.xlu0 %v5724_v35, %s5503_s21 }
 0xa3a   : > { %v1549_v38 = vpop.f32.mrb[20].mxu0 }
 0xa3b   : > { %v1555_v39 = vadd.f32 %v1549_v38, %v1339_v8  ;;  %v5032_v40 = vpop.f32.mrb[21].mxu0 }
 0xa3c   : > { %v1552_v41 = vpop.f32.mrb[22].mxu0 }
 0xa3d   : > { %v5033_v42 = vpop.f32.mrb[23].mxu0 }
 0xa97   : > { %v1643_v44 = vpop.xlane.xlu0 %1642 }
 0xa98   : > { %5373 = vrcp.f32 %v1643_v44 }
 0xa9b   : > { %v1773_v47 = vpop.permute.xlu0 %1772 }
 0xaa2   : > { %v5374_v45 = vpop.eup %5373 }
 0xaa3   : > { %v1645_v46 = vmul.f32 %v5374_v45, %v5372_v36 }
 0xaa5   : > { %5042 = vmatmul.mubr.msk.f32.vlgmr.msra.gmra.mrb[20].mxu1 %vm697_vm1, %v1645_v46 }
 0xaa6   : > { %5051 = vmatpush3.xpose.msk.msra.mxu1 %vm697_vm1, %v1775_v43  ;;  %5052 = vmatprep.mubr.msk.f32.mxu1 %vm5498_vm0, %v5497_v19  ;;  %v4734_v43 = vld [vmem:[%s6314_s3 + $0x18] sm:$0xf] }
 0xaa7   : > { %5055 = vmatprep.subr.mxu1 %v5497_v19  ;;  %v2161_v44 = vsel %vm1034_vm2, %v4734_v43, 0 }
 0xaa9   : > { %5053 = vmatmul.mubr.msk.f32.vlgmr.msra.gmra.mrb[22].mxu1 %vm697_vm1, %v1773_v47 }
 0xaaa   : > { %5056 = vmatpush3.msra.mxu1 %v1863_v48  ;;  %5057 = vmatprep.mubr.msk.f32.mxu1 %vm5498_vm0, %v5497_v19 }
 0xaab   : > { %5066 = vmatprep.subr.mxu1 %v5497_v19 }
 0xb78   : > { %v1718_v51 = vpop.f32.mrb[20].mxu1 }
 0xb79   : > { %v1722_v52 = vpack.c.bf16 %v1718_v51, %v1718_v51  ;;  %v5043_v54 = vpop.f32.mrb[21].mxu1 }
 0xb7b   : > { %5047 = vmatmul.mubr.msk.bf16.vlgmr.msra.gmra.mrb[24].mxu0 %vm697_vm1, %v1722_v52 }
 0xb7c   : > { %v1846_v55 = vpop.f32.mrb[22].mxu1  ;;  %5062 = vmatprep.mubr.msk.bf16.mxu0 %vm5498_vm0, %v5497_v19  ;;  %5061 = vmatpush3.bf16.msra.mxu0 %v1945_v13 }
 0xb7d   : > { %v1850_v56 = vmul.f32 0.35355338, %v1846_v55  ;;  %v5054_v57 = vpop.f32.mrb[23].mxu1  ;;  %5076 = vmatprep.subr.bf16.mxu0 %v5497_v19 }
 0xb7f   : > { %v1851_v58 = vsel %vm697_vm1, %v1850_v56, -inf }
 0xb80   : > { %1852 = vmax.xlane.f32.xlu0 %v1851_v58 }
 0xb96   : > { %2078 = vrot.lane.b32.xlu0 %v5763_v53, %s5504_s24 }
 0xb9a   : > { %2206 = vrot.lane.b32.xlu0 %v5717_v32, %s5505_s23 }
 0xc0d   : > { %v1853_v59 = vpop.xlane.xlu0 %1852 }
 0xc0e   : > { %v1854_v60 = vsub.f32 %v1850_v56, %v1853_v59 }
 0xc10   : > { %v1855_v61 = vmul.f32 1.442695, %v1854_v60 }
 0xc11   : > { %v2079_v11 = vpop.permute.xlu0 %2078 }
 0xc12   : > { %5375 = vpow2.f32 %v1855_v61 }
 0xc15   : > { %v2207_v37 = vpop.permute.xlu0 %2206 }
 0xc1c   : > { %v5376_v62 = vpop.eup %5375 }
 0xc1d   : > { %v1857_v63 = vsel %vm697_vm1, %v5376_v62, 0.0 }
 0xc1e   : > { %1858 = vadd.xlane.f32.xlu1 %v1857_v63 }
 0xc2f   : > { %1988 = vrot.lane.b32.xlu1 %v5724_v35, %s5504_s24 }
 0xc4e   : > { %v1765_v0 = vpop.f32.mrb[24].mxu0 }
 0xc4f   : > { %v1771_v1 = vadd.f32 %v1765_v0, %v1555_v39  ;;  %v5048_v3 = vpop.f32.mrb[25].mxu0 }
 0xc50   : > { %v1768_v4 = vpop.f32.mrb[26].mxu0 }
 0xc51   : > { %v5049_v5 = vpop.f32.mrb[27].mxu0 }
 0xcab   : > { %v1859_v7 = vpop.xlane.xlu1 %1858 }
 0xcac   : > { %5377 = vrcp.f32 %v1859_v7 }
 0xcaf   : > { %v1989_v10 = vpop.permute.xlu1 %1988 }
 0xcb6   : > { %v5378_v8 = vpop.eup %5377 }
 0xcb7   : > { %v1861_v9 = vmul.f32 %v5378_v8, %v5376_v62 }
 0xcb9   : > { %5058 = vmatmul.mubr.msk.f32.vlgmr.msra.gmra.mrb[24].mxu1 %vm697_vm1, %v1861_v9 }
 0xcba   : > { %5067 = vmatpush3.xpose.msk.msra.mxu1 %vm697_vm1, %v1991_v6  ;;  %5068 = vmatprep.mubr.msk.f32.mxu1 %vm5498_vm0, %v5497_v19  ;;  %v4739_v6 = vld [vmem:[%s6314_s3 + $0x1c] sm:$0xf] }
 0xcbb   : > { %5071 = vmatprep.subr.mxu1 %v5497_v19  ;;  %v2377_v7 = vsel %vm1034_vm2, %v4739_v6, 0 }
 0xcbd   : > { %5069 = vmatmul.mubr.msk.f32.vlgmr.msra.gmra.mrb[26].mxu1 %vm697_vm1, %v1989_v10 }
 0xcbe   : > { %5072 = vmatpush3.msra.mxu1 %v2079_v11  ;;  %5073 = vmatprep.mubr.msk.f32.mxu1 %vm5498_vm0, %v5497_v19 }
 0xcbf   : > { %5082 = vmatprep.subr.mxu1 %v5497_v19 }
 0xd8c   : > { %v1934_v14 = vpop.f32.mrb[24].mxu1 }
 0xd8d   : > { %v1938_v15 = vpack.c.bf16 %v1934_v14, %v1934_v14  ;;  %v5059_v16 = vpop.f32.mrb[25].mxu1 }
 0xd8f   : > { %5063 = vmatmul.mubr.msk.bf16.vlgmr.msra.gmra.mrb[28].mxu0 %vm697_vm1, %v1938_v15 }
 0xd90   : > { %v2062_v17 = vpop.f32.mrb[26].mxu1  ;;  %5078 = vmatprep.mubr.msk.bf16.mxu0 %vm5498_vm0, %v5497_v19  ;;  %5077 = vmatpush3.bf16.msra.mxu0 %v2161_v44 }
 0xd91   : > { %v2066_v18 = vmul.f32 0.35355338, %v2062_v17  ;;  %v5070_v20 = vpop.f32.mrb[27].mxu1  ;;  %5092 = vmatprep.subr.bf16.mxu0 %v5497_v19 }
 0xd93   : > { %v2067_v23 = vsel %vm697_vm1, %v2066_v18, -inf }
 0xd94   : > { %2068 = vmax.xlane.f32.xlu1 %v2067_v23 }
 0xda5   : > { %2294 = vrot.lane.b32.xlu1 %v5763_v53, %s5505_s23 }
 0xda9   : > { %2422 = vrot.lane.b32.xlu1 %v5717_v32, %s5506_s20 }
 0xe21   : > { %v2069_v24 = vpop.xlane.xlu1 %2068 }
 0xe22   : > { %v2070_v26 = vsub.f32 %v2066_v18, %v2069_v24 }
 0xe24   : > { %v2071_v27 = vmul.f32 1.442695, %v2070_v26 }
 0xe25   : > { %v2295_v42 = vpop.permute.xlu1 %2294 }
 0xe26   : > { %5379 = vpow2.f32 %v2071_v27 }
 0xe29   : > { %v2423_v63 = vpop.permute.xlu1 %2422 }
 0xe30   : > { %v5380_v28 = vpop.eup %5379 }
 0xe31   : > { %v2073_v29 = vsel %vm697_vm1, %v5380_v28, 0.0 }
 0xe32   : > { %2074 = vadd.xlane.f32.xlu0 %v2073_v29 }
 0xe48   : > { %2204 = vrot.lane.b32.xlu0 %v5724_v35, %s5505_s23  ;;  %s429_s23 = sand.u32 1, %s5486_s26  }
 0xe62   : > { %v1981_v30 = vpop.f32.mrb[28].mxu0 }
 0xe63   : > { %v1987_v31 = vadd.f32 %v1981_v30, %v1771_v1  ;;  %v5064_v33 = vpop.f32.mrb[29].mxu0 }
 0xe64   : > { %v1984_v34 = vpop.f32.mrb[30].mxu0 }
 0xe65   : > { %v5065_v36 = vpop.f32.mrb[31].mxu0 }
 0xebf   : > { %v2075_v38 = vpop.xlane.xlu0 %2074 }
 0xec0   : > { %5381 = vrcp.f32 %v2075_v38 }
 0xec3   : > { %v2205_v41 = vpop.permute.xlu0 %2204 }
 0xeca   : > { %v5382_v39 = vpop.eup %5381 }
 0xecb   : > { %v2077_v40 = vmul.f32 %v5382_v39, %v5380_v28 }
 0xecd   : > { %5074 = vmatmul.mubr.msk.f32.vlgmr.msra.gmra.mrb[28].mxu1 %vm697_vm1, %v2077_v40 }
 0xece   : > { %5083 = vmatpush3.xpose.msk.msra.mxu1 %vm697_vm1, %v2207_v37  ;;  %5084 = vmatprep.mubr.msk.f32.mxu1 %vm5498_vm0, %v5497_v19  ;;  %v4744_v37 = vld [vmem:[%s6314_s3 + $0x20] sm:$0xf] }
 0xecf   : > { %5087 = vmatprep.subr.mxu1 %v5497_v19  ;;  %v2593_v38 = vsel %vm1034_vm2, %v4744_v37, 0 }
 0xed1   : > { %5085 = vmatmul.mubr.msk.f32.vlgmr.msra.gmra.mrb[30].mxu1 %vm697_vm1, %v2205_v41 }
 0xed2   : > { %5088 = vmatpush3.msra.mxu1 %v2295_v42  ;;  %5089 = vmatprep.mubr.msk.f32.mxu1 %vm5498_vm0, %v5497_v19 }
 0xed3   : > { %5098 = vmatprep.subr.mxu1 %v5497_v19 }
 0xfa0   : > { %v2150_v45 = vpop.f32.mrb[28].mxu1 }
 0xfa1   : > { %v2154_v46 = vpack.c.bf16 %v2150_v45, %v2150_v45  ;;  %v5075_v47 = vpop.f32.mrb[29].mxu1 }
 0xfa3   : > { %5079 = vmatmul.mubr.msk.bf16.vlgmr.msra.gmra.mrb[32].mxu0 %vm697_vm1, %v2154_v46 }
 0xfa4   : > { %v2278_v48 = vpop.f32.mrb[30].mxu1  ;;  %5094 = vmatprep.mubr.msk.bf16.mxu0 %vm5498_vm0, %v5497_v19  ;;  %5093 = vmatpush3.bf16.msra.mxu0 %v2377_v7 }
 0xfa5   : > { %v2282_v49 = vmul.f32 0.35355338, %v2278_v48  ;;  %v5086_v50 = vpop.f32.mrb[31].mxu1  ;;  %5108 = vmatprep.subr.bf16.mxu0 %v5497_v19 }
 0xfa7   : > { %v2283_v51 = vsel %vm697_vm1, %v2282_v49, -inf }
 0xfa8   : > { %2284 = vmax.xlane.f32.xlu0 %v2283_v51 }
 0xfbe   : > { %2510 = vrot.lane.b32.xlu0 %v5763_v53, %s5506_s20 }
 0xfc2   : > { %2638 = vrot.lane.b32.xlu0 %v5717_v32, %s5507_s22 }
0x1035   : > { %v2285_v52 = vpop.xlane.xlu0 %2284 }
0x1036   : > { %v2286_v54 = vsub.f32 %v2282_v49, %v2285_v52 }
0x1038   : > { %v2287_v55 = vmul.f32 1.442695, %v2286_v54 }
0x1039   : > { %v2511_v5 = vpop.permute.xlu0 %2510 }
0x103a   : > { %5383 = vpow2.f32 %v2287_v55 }
0x103d   : > { %v2639_v29 = vpop.permute.xlu0 %2638 }
0x1044   : > { %v5384_v56 = vpop.eup %5383 }
0x1045   : > { %v2289_v57 = vsel %vm697_vm1, %v5384_v56, 0.0 }
0x1046   : > { %2290 = vadd.xlane.f32.xlu1 %v2289_v57 }
0x1057   : > { %2420 = vrot.lane.b32.xlu1 %v5724_v35, %s5506_s20 }
0x1076   : > { %v2197_v58 = vpop.f32.mrb[32].mxu0 }
0x1077   : > { %v2203_v59 = vadd.f32 %v2197_v58, %v1987_v31  ;;  %v5080_v60 = vpop.f32.mrb[33].mxu0 }
0x1078   : > { %v2200_v61 = vpop.f32.mrb[34].mxu0 }
0x1079   : > { %v5081_v62 = vpop.f32.mrb[35].mxu0 }
0x10d3   : > { %v2291_v0 = vpop.xlane.xlu1 %2290 }
0x10d4   : > { %5385 = vrcp.f32 %v2291_v0 }
0x10d7   : > { %v2421_v4 = vpop.permute.xlu1 %2420 }
0x10de   : > { %v5386_v1 = vpop.eup %5385 }
0x10df   : > { %v2293_v3 = vmul.f32 %v5386_v1, %v5384_v56 }
0x10e1   : > { %5090 = vmatmul.mubr.msk.f32.vlgmr.msra.gmra.mrb[32].mxu1 %vm697_vm1, %v2293_v3 }
0x10e2   : > { %5099 = vmatpush3.xpose.msk.msra.mxu1 %vm697_vm1, %v2423_v63  ;;  %5100 = vmatprep.mubr.msk.f32.mxu1 %vm5498_vm0, %v5497_v19  ;;  %v4749_v63 = vld [vmem:[%s6314_s3 + $0x24] sm:$0xf] }
0x10e3   : > { %5103 = vmatprep.subr.mxu1 %v5497_v19  ;;  %v2809_v0 = vsel %vm1034_vm2, %v4749_v63, 0 }
0x10e5   : > { %5101 = vmatmul.mubr.msk.f32.vlgmr.msra.gmra.mrb[34].mxu1 %vm697_vm1, %v2421_v4 }
0x10e6   : > { %5104 = vmatpush3.msra.mxu1 %v2511_v5  ;;  %5105 = vmatprep.mubr.msk.f32.mxu1 %vm5498_vm0, %v5497_v19 }
0x10e7   : > { %5114 = vmatprep.subr.mxu1 %v5497_v19 }
0x11b4   : > { %v2366_v8 = vpop.f32.mrb[32].mxu1 }
0x11b5   : > { %v2370_v9 = vpack.c.bf16 %v2366_v8, %v2366_v8  ;;  %v5091_v10 = vpop.f32.mrb[33].mxu1 }
0x11b7   : > { %5095 = vmatmul.mubr.msk.bf16.vlgmr.msra.gmra.mrb[36].mxu0 %vm697_vm1, %v2370_v9 }
0x11b8   : > { %v2494_v11 = vpop.f32.mrb[34].mxu1  ;;  %5110 = vmatprep.mubr.msk.bf16.mxu0 %vm5498_vm0, %v5497_v19  ;;  %5109 = vmatpush3.bf16.msra.mxu0 %v2593_v38 }
0x11b9   : > { %v2498_v12 = vmul.f32 0.35355338, %v2494_v11  ;;  %v5102_v13 = vpop.f32.mrb[35].mxu1  ;;  %5124 = vmatprep.subr.bf16.mxu0 %v5497_v19 }
0x11bb   : > { %v2499_v14 = vsel %vm697_vm1, %v2498_v12, -inf }
0x11bc   : > { %2500 = vmax.xlane.f32.xlu1 %v2499_v14 }
0x11cd   : > { %2726 = vrot.lane.b32.xlu1 %v5763_v53, %s5507_s22 }
0x11d1   : > { %2854 = vrot.lane.b32.xlu1 %v5717_v32, %s5508_s19 }
0x1249   : > { %v2501_v15 = vpop.xlane.xlu1 %2500 }
0x124a   : > { %v2502_v16 = vsub.f32 %v2498_v12, %v2501_v15 }
0x124c   : > { %v2503_v17 = vmul.f32 1.442695, %v2502_v16 }
0x124d   : > { %v2727_v36 = vpop.permute.xlu1 %2726 }
0x124e   : > { %5387 = vpow2.f32 %v2503_v17 }
0x1251   : > { %v2855_v57 = vpop.permute.xlu1 %2854 }
0x1258   : > { %v5388_v18 = vpop.eup %5387 }
0x1259   : > { %v2505_v20 = vsel %vm697_vm1, %v5388_v18, 0.0 }
0x125a   : > { %2506 = vadd.xlane.f32.xlu0 %v2505_v20 }
0x1270   : > { %2636 = vrot.lane.b32.xlu0 %v5724_v35, %s5507_s22  ;;  %s4820_s22 = sshll.u32 %s5606_s29, 7  ;;  %s5514_s29 = smov [#allocation2]  }
0x128a   : > { %v2413_v23 = vpop.f32.mrb[36].mxu0 }
0x128b   : > { %v2419_v24 = vadd.f32 %v2413_v23, %v2203_v59  ;;  %v5096_v26 = vpop.f32.mrb[37].mxu0 }
0x128c   : > { %v2416_v27 = vpop.f32.mrb[38].mxu0 }
0x128d   : > { %v5097_v28 = vpop.f32.mrb[39].mxu0 }
0x12e7   : > { %v2507_v30 = vpop.xlane.xlu0 %2506 }
0x12e8   : > { %5389 = vrcp.f32 %v2507_v30 }
0x12eb   : > { %v2637_v34 = vpop.permute.xlu0 %2636 }
0x12f2   : > { %v5390_v31 = vpop.eup %5389 }
0x12f3   : > { %v2509_v33 = vmul.f32 %v5390_v31, %v5388_v18 }
0x12f5   : > { %5106 = vmatmul.mubr.msk.f32.vlgmr.msra.gmra.mrb[36].mxu1 %vm697_vm1, %v2509_v33 }
0x12f6   : > { %5115 = vmatpush3.xpose.msk.msra.mxu1 %vm697_vm1, %v2639_v29  ;;  %5116 = vmatprep.mubr.msk.f32.mxu1 %vm5498_vm0, %v5497_v19  ;;  %v4754_v29 = vld [vmem:[%s6314_s3 + $0x28] sm:$0xf] }
0x12f7   : > { %5119 = vmatprep.subr.mxu1 %v5497_v19  ;;  %v3025_v30 = vsel %vm1034_vm2, %v4754_v29, 0 }
0x12f9   : > { %5117 = vmatmul.mubr.msk.f32.vlgmr.msra.gmra.mrb[38].mxu1 %vm697_vm1, %v2637_v34 }
0x12fa   : > { %5120 = vmatpush3.msra.mxu1 %v2727_v36  ;;  %5121 = vmatprep.mubr.msk.f32.mxu1 %vm5498_vm0, %v5497_v19 }
0x12fb   : > { %5130 = vmatprep.subr.mxu1 %v5497_v19 }
0x13c8   : > { %v2582_v39 = vpop.f32.mrb[36].mxu1 }
0x13c9   : > { %v2586_v40 = vpack.c.bf16 %v2582_v39, %v2582_v39  ;;  %v5107_v41 = vpop.f32.mrb[37].mxu1 }
0x13cb   : > { %5111 = vmatmul.mubr.msk.bf16.vlgmr.msra.gmra.mrb[40].mxu0 %vm697_vm1, %v2586_v40 }
0x13cc   : > { %v2710_v42 = vpop.f32.mrb[38].mxu1  ;;  %5126 = vmatprep.mubr.msk.bf16.mxu0 %vm5498_vm0, %v5497_v19  ;;  %5125 = vmatpush3.bf16.msra.mxu0 %v2809_v0 }
0x13cd   : > { %v2714_v43 = vmul.f32 0.35355338, %v2710_v42  ;;  %v5118_v44 = vpop.f32.mrb[39].mxu1  ;;  %5140 = vmatprep.subr.bf16.mxu0 %v5497_v19 }
0x13cf   : > { %v2715_v45 = vsel %vm697_vm1, %v2714_v43, -inf }
0x13d0   : > { %2716 = vmax.xlane.f32.xlu0 %v2715_v45 }
0x13e6   : > { %2942 = vrot.lane.b32.xlu0 %v5763_v53, %s5508_s19 }
0x13ea   : > { %3070 = vrot.lane.b32.xlu0 %v5717_v32, %s5509_s30 }
0x145d   : > { %v2717_v46 = vpop.xlane.xlu0 %2716 }
0x145e   : > { %v2718_v47 = vsub.f32 %v2714_v43, %v2717_v46 }
0x1460   : > { %v2719_v48 = vmul.f32 1.442695, %v2718_v47 }
0x1461   : > { %v2943_v62 = vpop.permute.xlu0 %2942 }
0x1462   : > { %5391 = vpow2.f32 %v2719_v48 }
0x1465   : > { %v3071_v20 = vpop.permute.xlu0 %3070 }
0x146c   : > { %v5392_v49 = vpop.eup %5391 }
0x146d   : > { %v2721_v50 = vsel %vm697_vm1, %v5392_v49, 0.0 }
0x146e   : > { %2722 = vadd.xlane.f32.xlu1 %v2721_v50 }
0x147f   : > { %2852 = vrot.lane.b32.xlu1 %v5724_v35, %s5508_s19 }
0x149e   : > { %v2629_v51 = vpop.f32.mrb[40].mxu0 }
0x149f   : > { %v2635_v52 = vadd.f32 %v2629_v51, %v2419_v24  ;;  %v5112_v54 = vpop.f32.mrb[41].mxu0 }
0x14a0   : > { %v2632_v55 = vpop.f32.mrb[42].mxu0 }
0x14a1   : > { %v5113_v56 = vpop.f32.mrb[43].mxu0 }
0x14fb   : > { %v2723_v58 = vpop.xlane.xlu1 %2722 }
0x14fc   : > { %5393 = vrcp.f32 %v2723_v58 }
0x14ff   : > { %v2853_v61 = vpop.permute.xlu1 %2852 }
0x1506   : > { %v5394_v59 = vpop.eup %5393 }
0x1507   : > { %v2725_v60 = vmul.f32 %v5394_v59, %v5392_v49 }
0x1509   : > { %5122 = vmatmul.mubr.msk.f32.vlgmr.msra.gmra.mrb[40].mxu1 %vm697_vm1, %v2725_v60 }
0x150a   : > { %5131 = vmatpush3.xpose.msk.msra.mxu1 %vm697_vm1, %v2855_v57  ;;  %5132 = vmatprep.mubr.msk.f32.mxu1 %vm5498_vm0, %v5497_v19  ;;  %v4759_v57 = vld [vmem:[%s6314_s3 + $0x2c] sm:$0xf] }
0x150b   : > { %5135 = vmatprep.subr.mxu1 %v5497_v19  ;;  %v3241_v58 = vsel %vm1034_vm2, %v4759_v57, 0 }
0x150d   : > { %5133 = vmatmul.mubr.msk.f32.vlgmr.msra.gmra.mrb[42].mxu1 %vm697_vm1, %v2853_v61 }
0x150e   : > { %5136 = vmatpush3.msra.mxu1 %v2943_v62  ;;  %5137 = vmatprep.mubr.msk.f32.mxu1 %vm5498_vm0, %v5497_v19 }
0x150f   : > { %5146 = vmatprep.subr.mxu1 %v5497_v19 }
0x15dc   : > { %v2798_v1 = vpop.f32.mrb[40].mxu1 }
0x15dd   : > { %v2802_v3 = vpack.c.bf16 %v2798_v1, %v2798_v1  ;;  %v5123_v4 = vpop.f32.mrb[41].mxu1 }
0x15df   : > { %5127 = vmatmul.mubr.msk.bf16.vlgmr.msra.gmra.mrb[44].mxu0 %vm697_vm1, %v2802_v3 }
0x15e0   : > { %v2926_v5 = vpop.f32.mrb[42].mxu1  ;;  %5142 = vmatprep.mubr.msk.bf16.mxu0 %vm5498_vm0, %v5497_v19  ;;  %5141 = vmatpush3.bf16.msra.mxu0 %v3025_v30 }
0x15e1   : > { %v2930_v6 = vmul.f32 0.35355338, %v2926_v5  ;;  %v5134_v7 = vpop.f32.mrb[43].mxu1  ;;  %5156 = vmatprep.subr.bf16.mxu0 %v5497_v19 }
0x15e3   : > { %v2931_v8 = vsel %vm697_vm1, %v2930_v6, -inf }
0x15e4   : > { %2932 = vmax.xlane.f32.xlu1 %v2931_v8 }
0x15f5   : > { %3158 = vrot.lane.b32.xlu1 %v5763_v53, %s5509_s30 }
0x15f9   : > { %3286 = vrot.lane.b32.xlu1 %v5717_v32, %s5510_s14 }
0x1671   : > { %v2933_v9 = vpop.xlane.xlu1 %2932 }
0x1672   : > { %v2934_v10 = vsub.f32 %v2930_v6, %v2933_v9 }
0x1674   : > { %v2935_v11 = vmul.f32 1.442695, %v2934_v10 }
0x1675   : > { %v3159_v28 = vpop.permute.xlu1 %3158 }
0x1676   : > { %5395 = vpow2.f32 %v2935_v11 }
0x1679   : > { %v3287_v50 = vpop.permute.xlu1 %3286 }
0x1680   : > { %v5396_v12 = vpop.eup %5395 }
0x1681   : > { %v2937_v13 = vsel %vm697_vm1, %v5396_v12, 0.0 }
0x1682   : > { %2938 = vadd.xlane.f32.xlu0 %v2937_v13 }
0x1698   : > { %3068 = vrot.lane.b32.xlu0 %v5724_v35, %s5509_s30  ;;  %s4676_s30 = sshll.u32 %s429_s23, 3 }
0x16b2   : > { %v2845_v14 = vpop.f32.mrb[44].mxu0 }
0x16b3   : > { %v2851_v15 = vadd.f32 %v2845_v14, %v2635_v52  ;;  %v5128_v16 = vpop.f32.mrb[45].mxu0 }
0x16b4   : > { %v2848_v17 = vpop.f32.mrb[46].mxu0 }
0x16b5   : > { %v5129_v18 = vpop.f32.mrb[47].mxu0 }
0x170f   : > { %v2939_v23 = vpop.xlane.xlu0 %2938 }
0x1710   : > { %5397 = vrcp.f32 %v2939_v23 }
0x1713   : > { %v3069_v27 = vpop.permute.xlu0 %3068 }
0x171a   : > { %v5398_v24 = vpop.eup %5397 }
0x171b   : > { %v2941_v26 = vmul.f32 %v5398_v24, %v5396_v12 }
0x171d   : > { %5138 = vmatmul.mubr.msk.f32.vlgmr.msra.gmra.mrb[44].mxu1 %vm697_vm1, %v2941_v26 }
0x171e   : > { %5147 = vmatpush3.xpose.msk.msra.mxu1 %vm697_vm1, %v3071_v20  ;;  %5148 = vmatprep.mubr.msk.f32.mxu1 %vm5498_vm0, %v5497_v19  ;;  %v4764_v20 = vld [vmem:[%s6314_s3 + $0x30] sm:$0xf] }
0x171f   : > { %5151 = vmatprep.subr.mxu1 %v5497_v19  ;;  %v3457_v23 = vsel %vm1034_vm2, %v4764_v20, 0 }
0x1721   : > { %5149 = vmatmul.mubr.msk.f32.vlgmr.msra.gmra.mrb[46].mxu1 %vm697_vm1, %v3069_v27 }
0x1722   : > { %5152 = vmatpush3.msra.mxu1 %v3159_v28  ;;  %5153 = vmatprep.mubr.msk.f32.mxu1 %vm5498_vm0, %v5497_v19 }
0x1723   : > { %5162 = vmatprep.subr.mxu1 %v5497_v19 }
0x17f0   : > { %v3014_v31 = vpop.f32.mrb[44].mxu1 }
0x17f1   : > { %v3018_v33 = vpack.c.bf16 %v3014_v31, %v3014_v31  ;;  %v5139_v34 = vpop.f32.mrb[45].mxu1 }
0x17f3   : > { %5143 = vmatmul.mubr.msk.bf16.vlgmr.msra.gmra.mrb[48].mxu0 %vm697_vm1, %v3018_v33 }
0x17f4   : > { %v3142_v36 = vpop.f32.mrb[46].mxu1  ;;  %5158 = vmatprep.mubr.msk.bf16.mxu0 %vm5498_vm0, %v5497_v19  ;;  %5157 = vmatpush3.bf16.msra.mxu0 %v3241_v58 }
0x17f5   : > { %v3146_v37 = vmul.f32 0.35355338, %v3142_v36  ;;  %v5150_v38 = vpop.f32.mrb[47].mxu1  ;;  %5172 = vmatprep.subr.bf16.mxu0 %v5497_v19 }
0x17f7   : > { %v3147_v39 = vsel %vm697_vm1, %v3146_v37, -inf }
0x17f8   : > { %3148 = vmax.xlane.f32.xlu0 %v3147_v39 }
0x180e   : > { %3374 = vrot.lane.b32.xlu0 %v5763_v53, %s5510_s14 }
0x1812   : > { %3502 = vrot.lane.b32.xlu0 %v5717_v32, %s5511_s27 }
0x1885   : > { %v3149_v40 = vpop.xlane.xlu0 %3148 }
0x1886   : > { %v3150_v41 = vsub.f32 %v3146_v37, %v3149_v40 }
0x1888   : > { %v3151_v42 = vmul.f32 1.442695, %v3150_v41 }
0x1889   : > { %v3375_v56 = vpop.permute.xlu0 %3374 }
0x188a   : > { %5399 = vpow2.f32 %v3151_v42 }
0x188d   : > { %v3503_v13 = vpop.permute.xlu0 %3502 }
0x1894   : > { %v5400_v43 = vpop.eup %5399 }
0x1895   : > { %v3153_v44 = vsel %vm697_vm1, %v5400_v43, 0.0 }
0x1896   : > { %3154 = vadd.xlane.f32.xlu1 %v3153_v44 }
0x18a7   : > { %3284 = vrot.lane.b32.xlu1 %v5724_v35, %s5510_s14 }
0x18c6   : > { %v3061_v45 = vpop.f32.mrb[48].mxu0 }
0x18c7   : > { %v3067_v46 = vadd.f32 %v3061_v45, %v2851_v15  ;;  %v5144_v47 = vpop.f32.mrb[49].mxu0 }
0x18c8   : > { %v3064_v48 = vpop.f32.mrb[50].mxu0 }
0x18c9   : > { %v5145_v49 = vpop.f32.mrb[51].mxu0 }
0x18ca   : > { %v4769_v49 = vld [vmem:[%s6314_s3 + $0x34] sm:$0xf] }
0x1923   : > { %v3155_v51 = vpop.xlane.xlu1 %3154 }
0x1924   : > { %5401 = vrcp.f32 %v3155_v51 }
0x1927   : > { %v3285_v55 = vpop.permute.xlu1 %3284 }
0x192e   : > { %v5402_v52 = vpop.eup %5401 }
0x192f   : > { %v3157_v54 = vmul.f32 %v5402_v52, %v5400_v43 }
0x1931   : > { %5154 = vmatmul.mubr.msk.f32.vlgmr.msra.gmra.mrb[48].mxu1 %vm697_vm1, %v3157_v54 }
0x1932   : > { %5163 = vmatpush3.xpose.msk.msra.mxu1 %vm697_vm1, %v3287_v50  ;;  %5164 = vmatprep.mubr.msk.f32.mxu1 %vm5498_vm0, %v5497_v19  ;;  %v3673_v50 = vsel %vm1034_vm2, %v4769_v49, 0 }
0x1933   : > { %5167 = vmatprep.subr.mxu1 %v5497_v19 }
0x1935   : > { %5165 = vmatmul.mubr.msk.f32.vlgmr.msra.gmra.mrb[50].mxu1 %vm697_vm1, %v3285_v55 }
0x1936   : > { %5168 = vmatpush3.msra.mxu1 %v3375_v56  ;;  %5169 = vmatprep.mubr.msk.f32.mxu1 %vm5498_vm0, %v5497_v19 }
0x1937   : > { %5178 = vmatprep.subr.mxu1 %v5497_v19 }
0x1a04   : > { %v3230_v59 = vpop.f32.mrb[48].mxu1 }
0x1a05   : > { %v3234_v60 = vpack.c.bf16 %v3230_v59, %v3230_v59  ;;  %v5155_v61 = vpop.f32.mrb[49].mxu1 }
0x1a07   : > { %5159 = vmatmul.mubr.msk.bf16.vlgmr.msra.gmra.mrb[52].mxu0 %vm697_vm1, %v3234_v60 }
0x1a08   : > { %v3358_v62 = vpop.f32.mrb[50].mxu1  ;;  %5174 = vmatprep.mubr.msk.bf16.mxu0 %vm5498_vm0, %v5497_v19  ;;  %5173 = vmatpush3.bf16.msra.mxu0 %v3457_v23 }
0x1a09   : > { %v3362_v63 = vmul.f32 0.35355338, %v3358_v62  ;;  %v5166_v0 = vpop.f32.mrb[51].mxu1  ;;  %5188 = vmatprep.subr.bf16.mxu0 %v5497_v19 }
0x1a0b   : > { %v3363_v1 = vsel %vm697_vm1, %v3362_v63, -inf }
0x1a0c   : > { %3364 = vmax.xlane.f32.xlu1 %v3363_v1 }
0x1a1d   : > { %3590 = vrot.lane.b32.xlu1 %v5763_v53, %s5511_s27 }
0x1a21   : > { %3718 = vrot.lane.b32.xlu1 %v5717_v32, %s5512_s15 }
0x1a99   : > { %v3365_v3 = vpop.xlane.xlu1 %3364 }
0x1a9a   : > { %v3366_v4 = vsub.f32 %v3362_v63, %v3365_v3 }
0x1a9c   : > { %v3367_v5 = vmul.f32 1.442695, %v3366_v4 }
0x1a9d   : > { %v3591_v18 = vpop.permute.xlu1 %3590 }
0x1a9e   : > { %5403 = vpow2.f32 %v3367_v5 }
0x1aa1   : > { %v3719_v44 = vpop.permute.xlu1 %3718 }
0x1aa8   : > { %v5404_v6 = vpop.eup %5403 }
0x1aa9   : > { %v3369_v7 = vsel %vm697_vm1, %v5404_v6, 0.0 }
0x1aaa   : > { %3370 = vadd.xlane.f32.xlu0 %v3369_v7 }
0x1ac0   : > { %3500 = vrot.lane.b32.xlu0 %v5724_v35, %s5511_s27  ;;  %s431_s27 = scalar_lea.vmem [#allocation2], %s4676_s30  ;;  %s5436_s30 = sshll.u32 %s5514_s29, 4  ;;  %s5437_s30 = int_to_ptr.vmem [resolvable:$false] %s5436_s30 }
0x1ac1   : > { %s5438_s14 = scalar_lea.vmem %s5437_s30, 256 }
0x1ada   : > { %v3277_v8 = vpop.f32.mrb[52].mxu0 }
0x1adb   : > { %v3283_v9 = vadd.f32 %v3277_v8, %v3067_v46  ;;  %v5160_v10 = vpop.f32.mrb[53].mxu0 }
0x1adc   : > { %v3280_v11 = vpop.f32.mrb[54].mxu0  ;;  %v4774_v10 = vld [vmem:[%s6314_s3 + $0x38] sm:$0xf] }
0x1add   : > { %v5161_v12 = vpop.f32.mrb[55].mxu0  ;;  %v3889_v11 = vsel %vm1034_vm2, %v4774_v10, 0  ;;  %v4782_v10 = vld [vmem:[%s6316_s5] ss:$0 sm:$0xff] }
0x1b37   : > { %v3371_v14 = vpop.xlane.xlu0 %3370 }
0x1b38   : > { %5405 = vrcp.f32 %v3371_v14 }
0x1b3b   : > { %v3501_v17 = vpop.permute.xlu0 %3500 }
0x1b42   : > { %v5406_v15 = vpop.eup %5405 }
0x1b43   : > { %v3373_v16 = vmul.f32 %v5406_v15, %v5404_v6 }
0x1b45   : > { %5170 = vmatmul.mubr.msk.f32.vlgmr.msra.gmra.mrb[52].mxu1 %vm697_vm1, %v3373_v16 }
0x1b46   : > { %5179 = vmatpush3.xpose.msk.msra.mxu1 %vm697_vm1, %v3503_v13  ;;  %5180 = vmatprep.mubr.msk.f32.mxu1 %vm5498_vm0, %v5497_v19 }
0x1b47   : > { %5183 = vmatprep.subr.mxu1 %v5497_v19 }
0x1b49   : > { %5181 = vmatmul.mubr.msk.f32.vlgmr.msra.gmra.mrb[54].mxu1 %vm697_vm1, %v3501_v17 }
0x1b4a   : > { %5184 = vmatpush3.msra.mxu1 %v3591_v18  ;;  %5185 = vmatprep.mubr.msk.f32.mxu1 %vm5498_vm0, %v5497_v19 }
0x1b4b   : > { %5194 = vmatprep.subr.mxu1 %v5497_v19 }
0x1c18   : > { %v3446_v24 = vpop.f32.mrb[52].mxu1 }
0x1c19   : > { %v3450_v26 = vpack.c.bf16 %v3446_v24, %v3446_v24  ;;  %v5171_v27 = vpop.f32.mrb[53].mxu1 }
0x1c1b   : > { %5175 = vmatmul.mubr.msk.bf16.vlgmr.msra.gmra.mrb[56].mxu0 %vm697_vm1, %v3450_v26 }
0x1c1c   : > { %v3574_v28 = vpop.f32.mrb[54].mxu1  ;;  %5190 = vmatprep.mubr.msk.bf16.mxu0 %vm5498_vm0, %v5497_v19  ;;  %5189 = vmatpush3.bf16.msra.mxu0 %v3673_v50  ;;  %v5317_v50 = vld [vmem:[%s6318_s7 + $0x4] ss:$8 sps:$4 sm:$0xff]  }
0x1c1d   : > { %v3578_v29 = vmul.f32 0.35355338, %v3574_v28  ;;  %v5182_v30 = vpop.f32.mrb[55].mxu1  ;;  %5204 = vmatprep.subr.bf16.mxu0 %v5497_v19 }
0x1c1f   : > { %v3579_v31 = vsel %vm697_vm1, %v3578_v29, -inf }
0x1c20   : > { %3580 = vmax.xlane.f32.xlu0 %v3579_v31 }
0x1c36   : > { %3806 = vrot.lane.b32.xlu0 %v5763_v53, %s5512_s15 }
0x1c3a   : > { %3934 = vrot.lane.b32.xlu0 %v5717_v32, %s5513_s16 }
0x1cad   : > { %v3581_v33 = vpop.xlane.xlu0 %3580 }
0x1cae   : > { %v3582_v34 = vsub.f32 %v3578_v29, %v3581_v33 }
0x1cb0   : > { %v3583_v36 = vmul.f32 1.442695, %v3582_v34 }
0x1cb1   : > { %v3807_v48 = vpop.permute.xlu0 %3806 }
0x1cb2   : > { %5407 = vpow2.f32 %v3583_v36 }
0x1cb5   : > { %v3935_v6 = vpop.permute.xlu0 %3934 }
0x1cbc   : > { %v5408_v37 = vpop.eup %5407 }
0x1cbd   : > { %v3585_v38 = vsel %vm697_vm1, %v5408_v37, 0.0 }
0x1cbe   : > { %3586 = vadd.xlane.f32.xlu1 %v3585_v38 }
0x1ccf   : > { %3716 = vrot.lane.b32.xlu1 %v5724_v35, %s5512_s15  ;;  %s6269_s15 = scalar_lea.hbm %s6324_s13, %s4820_s22 }
0x1cee   : > { %v3493_v39 = vpop.f32.mrb[56].mxu0 }
0x1cef   : > { %v3499_v40 = vadd.f32 %v3493_v39, %v3283_v9  ;;  %v5176_v41 = vpop.f32.mrb[57].mxu0 }
0x1cf0   : > { %v3496_v42 = vpop.f32.mrb[58].mxu0 }
0x1cf1   : > { %v5177_v43 = vpop.f32.mrb[59].mxu0 }
0x1cf2   : > { %v4781_v43 = vld [vmem:[%s6315_s4] ss:$0 sm:$0xff] }
0x1d4b   : > { %v3587_v45 = vpop.xlane.xlu1 %3586 }
0x1d4c   : > { %5409 = vrcp.f32 %v3587_v45 }
0x1d4f   : > { %v3717_v47 = vpop.permute.xlu1 %3716 }
0x1d56   : > { %v5410_v32 = vpop.eup %5409 }
0x1d57   : > { %v3589_v46 = vmul.f32 %v5410_v32, %v5408_v37 }
0x1d59   : > { %5186 = vmatmul.mubr.msk.f32.vlgmr.msra.gmra.mrb[56].mxu1 %vm697_vm1, %v3589_v46 }
0x1d5a   : > { %5195 = vmatpush3.xpose.msk.msra.mxu1 %vm697_vm1, %v3719_v44  ;;  %5196 = vmatprep.mubr.msk.f32.mxu1 %vm5498_vm0, %v5497_v19 }
0x1d5b   : > { %5199 = vmatprep.subr.mxu1 %v5497_v19 }
0x1d5d   : > { %5197 = vmatmul.mubr.msk.f32.vlgmr.msra.gmra.mrb[58].mxu1 %vm697_vm1, %v3717_v47 }
0x1d5e   : > { %5200 = vmatpush3.msra.mxu1 %v3807_v48  ;;  %5201 = vmatprep.mubr.msk.f32.mxu1 %vm5498_vm0, %v5497_v19  ;;  %v5431_v48 = vld [vmem:[%s5684_s17] sm:$0xff]  ;;  %s4613_s17 = sshll.u32 %s431_s27, 4  ;;  %s6271_s17 = int_to_ptr.vmem [resolvable:$true] %s4613_s17 }
0x1d5f   : > { %5210 = vmatprep.subr.mxu1 %v5497_v19  ;;  %s5432_s20 = scalar_lea.vmem %s6271_s17, 128  ;;  %p5439_p0 = scmp.lt.s32.totalorder %s6271_s17, %s5437_s30 }
0x1d60   : > { %p5433_p11 = scmp.ne.s32.totalorder %s6271_s17, %s5432_s20  ;;  %p5440_p1 = scmp.lt.s32.totalorder %s5438_s14, %s5432_s20 }
0x1d62   : > { %p5434_p12 = pnand %p5433_p11, %p5623_p5  ;;  %p5441_p2 = por %p5440_p1, %p5439_p0 }
0x1d64   : > { %p5435_p13 = pneg %p5434_p12 }
0x1d66   : > { %p5442_p3 = pnand %p5441_p2, %p5435_p13 }
0x1e2c   : > { %v3662_v51 = vpop.f32.mrb[56].mxu1 }
0x1e2d   : > { %v3666_v52 = vpack.c.bf16 %v3662_v51, %v3662_v51  ;;  %v5187_v54 = vpop.f32.mrb[57].mxu1  ;;  %v5320_v51 = vld [vmem:[%s6318_s7 + $0x14] ss:$8 sps:$4 sm:$0xff]  }
0x1e2e   : > { %v5323_v54 = vld [vmem:[%s6318_s7 + $0x24] ss:$8 sps:$4 sm:$0xff]  }
0x1e2f   : > { %5191 = vmatmul.mubr.msk.bf16.vlgmr.msra.gmra.mrb[60].mxu0 %vm697_vm1, %v3666_v52  ;;  %v5318_v52 = vld [vmem:[%s6318_s7 + $0x10] ss:$8 sps:$4 sm:$0xff]  }
0x1e30   : > { %v3790_v55 = vpop.f32.mrb[58].mxu1  ;;  %5206 = vmatprep.mubr.msk.bf16.mxu0 %vm5498_vm0, %v5497_v19  ;;  %5205 = vmatpush3.bf16.msra.mxu0 %v3889_v11 }
0x1e31   : > { %v3794_v56 = vmul.f32 0.35355338, %v3790_v55  ;;  %v5198_v57 = vpop.f32.mrb[59].mxu1  ;;  %5220 = vmatprep.subr.bf16.mxu0 %v5497_v19  ;;  %v5321_v55 = vld [vmem:[%s6318_s7 + $0x20] ss:$8 sps:$4 sm:$0xff]  }
0x1e33   : > { %v3795_v58 = vsel %vm697_vm1, %v3794_v56, -inf }
0x1e34   : > { %3796 = vmax.xlane.f32.xlu1 %v3795_v58 }
0x1ec1   : > { %v3797_v59 = vpop.xlane.xlu1 %3796 }
0x1ec2   : > { %v3798_v60 = vsub.f32 %v3794_v56, %v3797_v59 }
0x1ec4   : > { %v3799_v61 = vmul.f32 1.442695, %v3798_v60  ;;  %v5326_v60 = vld [vmem:[%s6318_s7 + $0x34] ss:$8 sps:$4 sm:$0xff]  }
0x1ec6   : > { %5411 = vpow2.f32 %v3799_v61  ;;  %v5324_v61 = vld [vmem:[%s6318_s7 + $0x30] ss:$8 sps:$4 sm:$0xff]  }
0x1ed0   : > { %v5412_v62 = vpop.eup %5411 }
0x1ed1   : > { %v3801_v63 = vsel %vm697_vm1, %v5412_v62, 0.0 }
0x1ed2   : > { %3802 = vadd.xlane.f32.xlu0 %v3801_v63  ;;  %v5327_v63 = vld [vmem:[%s6318_s7 + $0x40] ss:$8 sps:$4 sm:$0xff]  }
0x1ee8   : > { %3932 = vrot.lane.b32.xlu0 %v5724_v35, %s5513_s16 }
0x1f02   : > { %v3709_v0 = vpop.f32.mrb[60].mxu0 }
0x1f03   : > { %v3715_v1 = vadd.f32 %v3709_v0, %v3499_v40  ;;  %v5192_v3 = vpop.f32.mrb[61].mxu0  ;;  %v5332_v0 = vld [vmem:[%s6318_s7 + $0x54] ss:$8 sps:$4 sm:$0xff]  }
0x1f04   : > { %v3712_v4 = vpop.f32.mrb[62].mxu0  ;;  %v5335_v3 = vld [vmem:[%s6318_s7 + $0x64] ss:$8 sps:$4 sm:$0xff]  }
0x1f05   : > { %v5193_v5 = vpop.f32.mrb[63].mxu0  ;;  %v5333_v4 = vld [vmem:[%s6318_s7 + $0x60] ss:$8 sps:$4 sm:$0xff]  }
0x1f06   : > { %v5338_v5 = vld [vmem:[%s6318_s7 + $0x74] ss:$8 sps:$4 sm:$0xff]  }
0x1f5f   : > { %v3803_v7 = vpop.xlane.xlu0 %3802 }
0x1f60   : > { %5413 = vrcp.f32 %v3803_v7 }
0x1f63   : > { %v3933_v35 = vpop.permute.xlu0 %3932 }
0x1f6a   : > { %v5414_v8 = vpop.eup %5413 }
0x1f6b   : > { %v3805_v9 = vmul.f32 %v5414_v8, %v5412_v62  ;;  %v5329_v62 = vld [vmem:[%s6318_s7 + $0x44] ss:$8 sps:$4 sm:$0xff]  }
0x1f6d   : > { %5202 = vmatmul.mubr.msk.f32.vlgmr.msra.gmra.mrb[60].mxu1 %vm697_vm1, %v3805_v9 }
0x1f6e   : > { %5211 = vmatpush3.xpose.msk.msra.mxu1 %vm697_vm1, %v3935_v6  ;;  %5212 = vmatprep.mubr.msk.f32.mxu1 %vm5498_vm0, %v5497_v19  ;;  %v5336_v6 = vld [vmem:[%s6318_s7 + $0x70] ss:$8 sps:$4 sm:$0xff]  }
0x1f6f   : > { %5215 = vmatprep.subr.mxu1 %v5497_v19 }
0x1f71   : > { %5213 = vmatmul.mubr.msk.f32.vlgmr.msra.gmra.mrb[62].mxu1 %vm697_vm1, %v3933_v35 }
0x1f72   : > { %5217 = vmatprep.mubr.msk.f32.mxu1 %vm5498_vm0, %v5497_v19 }
0x2040   : > { %v3878_v12 = vpop.f32.mrb[60].mxu1 }
0x2041   : > { %v3882_v13 = vpack.c.bf16 %v3878_v12, %v3878_v12  ;;  %v5203_v14 = vpop.f32.mrb[61].mxu1  ;;  %v4783_v12 = vld [vmem:[%s6317_s6] ss:$0 sm:$0xff] }
0x2043   : > { %5207 = vmatmul.mubr.msk.bf16.vlgmr.msra.gmra.mrb[64].mxu0 %vm697_vm1, %v3882_v13 }
0x2044   : > { %v4006_v15 = vpop.f32.mrb[62].mxu1  ;;  %5222 = vmatprep.mubr.msk.bf16.mxu0 %vm5498_vm0, %v5497_v19  ;;  %v4779_v19 = vld [vmem:[%s6314_s3 + $0x3c] sm:$0xf] }
0x2045   : > { %v4010_v16 = vmul.f32 0.35355338, %v4006_v15  ;;  %v5214_v17 = vpop.f32.mrb[63].mxu1  ;;  %v4105_v28 = vsel %vm1034_vm2, %v4779_v19, 0  ;;  %v5347_v19 = vld [vmem:[%s6320_s9 + $0x60] sm:$0xff]  }
0x2046   : > { %5221 = vmatpush3.bf16.msra.mxu0 %v4105_v28  ;;  %v5340_v17 = vld [vmem:[%s6320_s9] sm:$0xff]  }
0x2047   : > { %v4011_v18 = vsel %vm697_vm1, %v4010_v16, -inf  ;;  %v5348_v28 = vld [vmem:[%s6320_s9 + $0x20] sm:$0xff]  }
0x2048   : > { %4012 = vmax.xlane.f32.xlu0 %v4011_v18  ;;  %v5341_v18 = vld [vmem:[%s6320_s9 + $0x48] sm:$0xff]  }
0x20d5   : > { %v4013_v20 = vpop.xlane.xlu0 %4012 }
0x20d6   : > { %v4014_v23 = vsub.f32 %v4010_v16, %v4013_v20  ;;  %v5339_v16 = vld [vmem:[%s6320_s9 + $0x40] sm:$0xff]   ;;  %v5342_v20 = vld [vmem:[%s6320_s9 + $0x8] sm:$0xff]  }
0x20d7   : > { %4928 = vmatprep.subr.bf16.mxu0 %v5339_v16 }
0x20d8   : > { %v4015_v24 = vmul.f32 1.442695, %v4014_v23  ;;  %v5343_v23 = vld [vmem:[%s6320_s9 + $0x50] sm:$0xff]  }
0x20da   : > { %5415 = vpow2.f32 %v4015_v24  ;;  %v5344_v24 = vld [vmem:[%s6320_s9 + $0x10] sm:$0xff]  }
0x20e4   : > { %v5416_v26 = vpop.eup %5415 }
0x20e5   : > { %v4017_v27 = vsel %vm697_vm1, %v5416_v26, 0.0 }
0x20e6   : > { %4018 = vadd.xlane.f32.xlu1 %v4017_v27  ;;  %v5346_v27 = vld [vmem:[%s6320_s9 + $0x18] sm:$0xff]  }
0x20f7   : > { %4022 = vrot.lane.b32.xlu1 %v5763_v53, %s5513_s16  ;;  %s4600_s16 = scalar_lea.sflag [#allocation3], %s429_s23 }
0x2116   : > { %v3925_v29 = vpop.f32.mrb[64].mxu0 }
0x2117   : > { %v3931_v30 = vadd.f32 %v3925_v29, %v3715_v1  ;;  %v5208_v31 = vpop.f32.mrb[65].mxu0  ;;  %v5330_v1 = vld [vmem:[%s6318_s7 + $0x50] ss:$8 sps:$4 sm:$0xff]   ;;  %v5349_v29 = vld [vmem:[%s6320_s9 + $0x68] sm:$0xff]  }
0x2118   : > { %v3928_v33 = vpop.f32.mrb[66].mxu0  ;;  %v5351_v31 = vld [vmem:[%s6320_s9 + $0x70] sm:$0xff]  }
0x2119   : > { %v5209_v34 = vpop.f32.mrb[67].mxu0  ;;  %v5352_v33 = vld [vmem:[%s6320_s9 + $0x30] sm:$0xff]  }
0x211a   : > { %v5353_v34 = vld [vmem:[%s6320_s9 + $0x78] sm:$0xff]  }
0x2173   : > { %v4019_v36 = vpop.xlane.xlu1 %4018 }
0x2174   : > { %5417 = vrcp.f32 %v4019_v36  ;;  %v5354_v36 = vld [vmem:[%s6320_s9 + $0x38] sm:$0xff]  }
0x2177   : > { %v4023_v37 = vpop.permute.xlu1 %4022 }
0x2178   : > { %5216 = vmatpush3.msra.mxu1 %v4023_v37  ;;  %v4202_v37 = vld [vmem:[%s6319_s8] sm:$0x3] }
0x2179   : > { %4294 = vmatprep.subr.bf16.mxu1 %v5317_v50 }
0x217e   : > { %v5418_v38 = vpop.eup %5417 }
0x217f   : > { %v4021_v39 = vmul.f32 %v5418_v38, %v5416_v26  ;;  %v5345_v26 = vld [vmem:[%s6320_s9 + $0x58] sm:$0xff]   ;;  %v4207_v38 = vrot.slane %v4202_v37, %v475_v25 }
0x2181   : > { %5218 = vmatmul.mubr.msk.f32.vlgmr.msra.gmra.mrb[64].mxu1 %vm697_vm1, %v4021_v39  ;;  %v4211_v39 = vrot.slane %v4202_v37, %v479_v22 }
0x2182   : > { %4326 = vmatprep.mubr.bf16.mxu1 %v5496_v2  ;;  %v5315_v2 = vld [vmem:[%s6318_s7] ss:$8 sps:$4 sm:$0xff]  }
0x2183   : > { %4295 = vmatpush1.bf16.msra.mxu1 %v5315_v2 }
0x2184   : > { %4296 = vmatprep.subr.bf16.mxu1 %v5320_v51 }
0x2187   : > { %4297 = vmatpush1.bf16.msra.mxu1 %v5318_v52 }
0x2188   : > { %4298 = vmatprep.subr.bf16.mxu1 %v5323_v54 }
0x218b   : > { %4299 = vmatpush1.bf16.msra.mxu1 %v5321_v55 }
0x218c   : > { %4300 = vmatprep.subr.bf16.mxu1 %v5326_v60 }
0x218f   : > { %4301 = vmatpush1.bf16.msra.mxu1 %v5324_v61 }
0x2190   : > { %4302 = vmatprep.subr.bf16.mxu1 %v5329_v62 }
0x2193   : > { %4303 = vmatpush1.bf16.msra.mxu1 %v5327_v63 }
0x2194   : > { %4304 = vmatprep.subr.bf16.mxu1 %v5332_v0 }
0x2197   : > { %4305 = vmatpush1.bf16.msra.mxu1 %v5330_v1 }
0x2198   : > { %4306 = vmatprep.subr.bf16.mxu1 %v5335_v3 }
0x219b   : > { %4307 = vmatpush1.bf16.msra.mxu1 %v5333_v4 }
0x219c   : > { %4308 = vmatprep.subr.bf16.mxu1 %v5338_v5 }
0x219f   : > { %4309 = vmatpush1.bf16.msra.mxu1 %v5336_v6 }
0x2254   : > { %v4094_v53 = vpop.f32.mrb[64].mxu1 }
0x2255   : > { %v4098_v40 = vpack.c.bf16 %v4094_v53, %v4094_v53  ;;  %v5219_v41 = vpop.f32.mrb[65].mxu1 }
0x2257   : > { %5223 = vmatmul.mubr.msk.bf16.vlgmr.msra.gmra.mrb[68].mxu0 %vm697_vm1, %v4098_v40 }
0x2258   : > { %4929 = vmatpush3.bf16.msra.mxu0 %v5340_v17 }
0x2259   : > { %4930 = vmatprep.subr.bf16.mxu0 %v5341_v18 }
0x225c   : > { %4931 = vmatpush3.bf16.msra.mxu0 %v5342_v20 }
0x225d   : > { %4932 = vmatprep.subr.bf16.mxu0 %v5343_v23 }
0x2260   : > { %4933 = vmatpush3.bf16.msra.mxu0 %v5344_v24 }
0x2261   : > { %4934 = vmatprep.subr.bf16.mxu0 %v5345_v26 }
0x2264   : > { %4935 = vmatpush3.bf16.msra.mxu0 %v5346_v27 }
0x2265   : > { %4936 = vmatprep.subr.bf16.mxu0 %v5347_v19 }
0x2268   : > { %4937 = vmatpush3.bf16.msra.mxu0 %v5348_v28 }
0x2269   : > { %4938 = vmatprep.subr.bf16.mxu0 %v5349_v29 }
0x232a   : > { %v4141_v42 = vpop.f32.mrb[68].mxu0 }
0x232b   : > { %v4147_v44 = vadd.f32 %v4141_v42, %v3931_v30  ;;  %v5224_v45 = vpop.f32.mrb[69].mxu0  ;;  %v5350_v30 = vld [vmem:[%s6320_s9 + $0x28] sm:$0xff]  }
0x232c   : > { %v4144_v32 = vpop.f32.mrb[70].mxu0  ;;  %4939 = vmatpush3.bf16.msra.mxu0 %v5350_v30 }
0x232d   : > { %v4155_v46 = vadd.f32 %v4781_v43, %v4147_v44  ;;  %v5225_v47 = vpop.f32.mrb[71].mxu0  ;;  %4940 = vmatprep.subr.bf16.mxu0 %v5351_v31 }
0x232f   : > { %v4156_v49 = vadd.f32 %v5431_v48, %v4155_v46 }
0x2330   : > { %4941 = vmatpush3.bf16.msra.mxu0 %v5352_v33 }
0x2331   : > { %4159 = vadd.xlane.f32.xlu1 %v4156_v49  ;;  %4942 = vmatprep.subr.bf16.mxu0 %v5353_v34 }
0x2334   : > { %4943 = vmatpush3.bf16.msra.mxu0 %v5354_v36 }
0x23be   : > { %v4160_v56 = vpop.xlane.xlu1 %4159 }
0x23bf   : > { %v4162_v57 = vmul.f32 0.0078125, %v4160_v56 }
0x23c1   : > { %v4163_v58 = vsub.f32 %v4156_v49, %v4162_v57 }
0x23c3   : > { %v4164_v59 = vmul.f32 %v4163_v58, %v4163_v58 }
0x23c5   : > { %4165 = vadd.xlane.f32.xlu0 %v4164_v59 }
0x2452   : > { %v4166_v7 = vpop.xlane.xlu0 %4165 }
0x2453   : > { %v4167_v8 = vmul.f32 0.0078125, %v4166_v7 }
0x2455   : > { %v4168_v9 = vadd.f32 1e-12, %v4167_v8 }
0x2457   : > { %5419 = vrsqrt.f32 %v4168_v9 }
0x2461   : > { %v5420_v35 = vpop.eup %5419 }
0x2462   : > { %v4170_v11 = vmul.f32 %v5420_v35, %v4163_v58 }
0x2464   : > { %v4177_v13 = vmul.f32 %v4782_v10, %v4170_v11 }
0x2466   : > { %v6195_v14 = vadd.f32 %v4783_v12, %v4177_v13 }
0x2468   : > { %v4185_v15 = vpack.c.bf16 %v6195_v14, %v6195_v14 }
0x246a   : > { %4327 = vmatmul.mubr.bf16.vlgmr.msra.gmra.mrb[68].mxu1 %v4185_v15 }
0x253d   : > { %v4328_v53 = vpop.f32.mrb[68].mxu1 }
0x253e   : > { %v4329_v40 = vadd.f32 %v4328_v53, %v4207_v38  ;;  %v4330_v41 = vpop.f32.mrb[69].mxu1 }
0x253f   : > { %v4331_v42 = vadd.f32 %v4330_v41, %v4211_v39  ;;  %v4332_v43 = vpop.f32.mrb[70].mxu1 }
0x2540   : > { %v4337_v44 = vmul.f32 0.70710677, %v4329_v40  ;;  %v4333_v45 = vpop.f32.mrb[71].mxu1  ;;  %v4335_v30 = vmul.f32 0.5, %v4329_v40  ;;  %v4800_v43 = vld [vmem:[%s6321_s10] ss:$0 sm:$0xff] }
0x2541   : > { %v4338_v32 = vmul.f32 0.70710677, %v4331_v42  ;;  %v4336_v34 = vmul.f32 0.5, %v4331_v42 }
0x2542   : > { %v4339_v46 = vand.u32 2147483647, %v4337_v44  ;;  %vm4383_vm3 = vcmp.ge.f32.partialorder %v4337_v44, 0.0 }
0x2543   : > { %v4340_v47 = vand.u32 2147483647, %v4338_v32  ;;  %vm4384_vm4 = vcmp.ge.f32.partialorder %v4338_v32, 0.0 }
0x2544   : > { %v4341_v48 = vmul.f32 0.3275911, %v4339_v46  ;;  %v4371_v22 = vsub.f32 0.0, %v4339_v46 }
0x2545   : > { %v4342_v49 = vmul.f32 0.3275911, %v4340_v47  ;;  %v4372_v55 = vsub.f32 0.0, %v4340_v47 }
0x2546   : > { %v4343_v2 = vadd.f32 1.0, %v4341_v48  ;;  %v4373_v58 = vmul.f32 %v4371_v22, %v4339_v46  ;;  %v4817_v22 = vld [vmem:[%s6322_s11] ss:$0 sm:$0xff] }
0x2547   : > { %v4344_v50 = vadd.f32 1.0, %v4342_v49  ;;  %v4374_v61 = vmul.f32 %v4372_v55, %v4340_v47 }
0x2548   : > { %5421 = vrcp.f32 %v4343_v2  ;;  %v4375_v0 = vmul.f32 1.442695, %v4373_v58 }
0x2549   : > { %5423 = vrcp.f32 %v4344_v50  ;;  %v4377_v4 = vmul.f32 1.442695, %v4374_v61 }
0x254a   : > { %5425 = vpow2.f32 %v4375_v0 }
0x254b   : > { %5427 = vpow2.f32 %v4377_v4 }
0x2552   : > { %v5422_v25 = vpop.eup %5421 }
0x2553   : > { %v5424_v51 = vpop.eup %5423  ;;  %v4347_v21 = vmul.f32 %v5422_v25, %v4343_v2 }
0x2554   : > { %v4348_v52 = vmul.f32 %v5424_v51, %v4344_v50  ;;  %v5426_v17 = vpop.eup %5425 }
0x2555   : > { %v4349_v54 = vsub.f32 2.0, %v4347_v21  ;;  %v5428_v20 = vpop.eup %5427 }
0x2556   : > { %v4350_v56 = vsub.f32 2.0, %v4348_v52  ;;  %v4818_v52 = vld [vmem:[%s6323_s12] ss:$0 sm:$0xff] }
0x2557   : > { %v4351_v57 = vmul.f32 %v5422_v25, %v4349_v54 }
0x2558   : > { %v4352_v59 = vmul.f32 %v5424_v51, %v4350_v56 }
0x2559   : > { %v4353_v60 = vmul.f32 1.0614054, %v4351_v57 }
0x255a   : > { %v4354_v62 = vmul.f32 1.0614054, %v4352_v59 }
0x255b   : > { %v4355_v63 = vadd.f32 -1.4531521, %v4353_v60 }
0x255c   : > { %v4356_v1 = vadd.f32 -1.4531521, %v4354_v62 }
0x255d   : > { %v4357_v3 = vmul.f32 %v4355_v63, %v4351_v57 }
0x255e   : > { %v4358_v5 = vmul.f32 %v4356_v1, %v4352_v59 }
0x255f   : > { %v4359_v6 = vadd.f32 1.4214138, %v4357_v3 }
0x2560   : > { %v4360_v7 = vadd.f32 1.4214138, %v4358_v5 }
0x2561   : > { %v4361_v8 = vmul.f32 %v4359_v6, %v4351_v57 }
0x2562   : > { %v4362_v9 = vmul.f32 %v4360_v7, %v4352_v59 }
0x2563   : > { %v4363_v35 = vadd.f32 -0.28449672, %v4361_v8 }
0x2564   : > { %v4364_v10 = vadd.f32 -0.28449672, %v4362_v9 }
0x2565   : > { %v4365_v11 = vmul.f32 %v4363_v35, %v4351_v57 }
0x2566   : > { %v4366_v12 = vmul.f32 %v4364_v10, %v4352_v59 }
0x2567   : > { %v4367_v13 = vadd.f32 0.2548296, %v4365_v11 }
0x2568   : > { %v4368_v15 = vadd.f32 0.2548296, %v4366_v12 }
0x2569   : > { %v4369_v16 = vmul.f32 %v4367_v13, %v4351_v57 }
0x256a   : > { %v4370_v18 = vmul.f32 %v4368_v15, %v4352_v59 }
0x256b   : > { %v4379_v23 = vmul.f32 %v5426_v17, %v4369_v16 }
0x256c   : > { %v4380_v24 = vmul.f32 %v5428_v20, %v4370_v18 }
0x256d   : > { %v4381_v26 = vsub.f32 1.0, %v4379_v23 }
0x256e   : > { %v4382_v27 = vsub.f32 1.0, %v4380_v24 }
0x256f   : > { %v4385_v19 = vsub.f32 0.0, %v4381_v26 }
0x2570   : > { %v4386_v28 = vsub.f32 0.0, %v4382_v27 }
0x2571   : > { %v4387_v29 = vsel %vm4383_vm3, %v4381_v26, %v4385_v19 }
0x2572   : > { %v4389_v31 = vadd.f32 1.0, %v4387_v29  ;;  %v4388_v33 = vsel %vm4384_vm4, %v4382_v27, %v4386_v28 }
0x2573   : > { %v4390_v36 = vadd.f32 1.0, %v4388_v33 }
0x2574   : > { %v4391_v37 = vmul.f32 %v4389_v31, %v4335_v30 }
0x2575   : > { %v4392_v38 = vmul.f32 %v4390_v36, %v4336_v34 }
0x2576   : > { %v4393_v53 = vpack.c.bf16 %v4391_v37, %v4391_v37 }
0x2577   : > { %v4394_v39 = vpack.c.bf16 %v4392_v38, %v4392_v38 }
0x2579   : > { %4562 = vmatprep.mubr.bf16.mxu0 %v4394_v39 }
0x257a   : > { %4563 = vmatmul.mubr.bf16.vlgmr.msra.gmra.mrb[72].mxu0 %v4393_v53 }
0x264d   : > { %v4944_v41 = vpop.f32.mrb[72].mxu0 }
0x264e   : > { %v4945_v44 = vpop.f32.mrb[73].mxu0 }
0x264f   : > { %v4946_v45 = vadd.f32 %v4945_v44, %v4944_v41  ;;  %v4947_v32 = vpop.f32.mrb[74].mxu0 }
0x2650   : > { %v4948_v40 = vpop.f32.mrb[75].mxu0 }
0x2651   : > { %v4565_v46 = vadd.f32 %v4946_v45, %v4800_v43 }
0x2653   : > { %v4570_v42 = vadd.f32 %v4565_v46, %v6195_v14 }
0x2655   : > { %4573 = vadd.xlane.f32.xlu0 %v4570_v42 }
0x26e2   : > { %v4574_v47 = vpop.xlane.xlu0 %4573 }
0x26e3   : > { %v4575_v48 = vmul.f32 0.0078125, %v4574_v47 }
0x26e5   : > { %v4576_v49 = vsub.f32 %v4570_v42, %v4575_v48 }
0x26e7   : > { %v4577_v2 = vmul.f32 %v4576_v49, %v4576_v49 }
0x26e9   : > { %4578 = vadd.xlane.f32.xlu0 %v4577_v2 }
0x2776   : > { %v4579_v50 = vpop.xlane.xlu0 %4578 }
0x2777   : > { %v4580_v25 = vmul.f32 0.0078125, %v4579_v50 }
0x2779   : > { %v4581_v51 = vadd.f32 1e-12, %v4580_v25 }
0x277b   : > { %5429 = vrsqrt.f32 %v4581_v51 }
0x2785   : > { %v5430_v21 = vpop.eup %5429 }
0x2786   : > { %v4583_v14 = vmul.f32 %v5430_v21, %v4576_v49 }
0x2788   : > { %v4590_v54 = vmul.f32 %v4817_v22, %v4583_v14 }
0x278a   : > { %v4597_v55 = vadd.f32 %v4818_v52, %v4590_v54 }
0x278c   : > { %4598 = vst [vmem:[%s431_s27] sm:$0xff] %v4597_v55 }
0x278d   : > { %5445 = shalt.err (!%p5442_p3)
}
0x278e   : > { %s5446_s23 = scalar_lea.hbm %s6269_s15, 128  ;;  %s5450_s27 = scalar_lea.hbm %s6324_s13, 256 }
0x278f   : > { %p5447_p4 = scmp.ne.s32.totalorder %s6269_s15, %s5446_s23  ;;  %p5451_p9 = scmp.lt.u32.totalorder %s6269_s15, %s6324_s13 }
0x2790   : > { %p5452_p10 = scmp.lt.u32.totalorder %s5450_s27, %s5446_s23  ;;  %p5454_p12 = scmp.lt.u32.totalorder %s5446_s23, %s6269_s15 }
0x2791   : > { %p5448_p7 = pnand %p5447_p4, %p5623_p5 }
0x2792   : > { %p5453_p11 = por %p5452_p10, %p5451_p9 }
0x2793   : > { %p5449_p8 = pneg %p5448_p7 }
0x2794   : > { %p5455_p13 = por %p5454_p12, %p5453_p11 }
0x2796   : > { %p5456_p0 = pnand %p5455_p13, %p5449_p8 }
0x2798   : > { %5459 = shalt.err (!%p5456_p0)
}
0x2799   : > { %5226 = dma.vmem_to_hbm [thread:$0]  (%p5623_p5), %s6271_s17, 128, %s6269_s15, %s4600_s16  }
0x279a PF: > { %p5232_p1 = scmp.ge.s32.totalorder %s5494_s28, 2  ;;  %s4625_s29 = sand.u32 1, %s5482_s25  }
0x279b   : > { %s4626_s30 = scalar_lea.sflag [#allocation3], %s4625_s29 }
0x279c   : > { %p5229_p2 = pnand %p5232_p1, %p5627_p6 }
0x279e   : > { %5477 = dma.done.wait (!%p5229_p2), %s4626_s30, 128  }
0x279f   : > { %5479 = vsyncadd (!%p5229_p2), %s4626_s30, 4294967168  ;;  %s6336_s28 = sld [smem:[#allocation6_spill]]  ;;  %s6337_s14 = sld [smem:[#allocation5_spill]] }
0x27a0   : > { %s6338_s27 = sld [smem:[#allocation7_spill]]  ;;  %s6339_s25 = smov %s5486_s26 }
0x27a5   : > { %p23_p3 = scmp.ge.s32.totalorder %s6336_s28, 4   ;;  %s6340_s26 = smov %s6337_s14 }
0x27a7   :  { %25 = sbr.rel (!%p23_p3) target bundleno = 3 (0x3), region = 122 }
0x27ae   :  { %4631 = vsyncpa [#allocation3], 1 }
0x27af   :  { %4633 = vsyncpa [#allocation3 + $0x1], 1 }

</bundles_post_ra>
